<compile_context>
chip_gen: v7x
topology: tpu7x:2x2x1
jax: 0.10.0
libtpu: 0.0.40
codegen_flags: <defaults>
</compile_context>

<pallas_src>
import math

import numpy as np

import jax
import jax.numpy as jnp
from jax.experimental import pallas as pl
from jax.experimental.pallas import tpu as pltpu


# ---------------------------------------------------------------------------
# Fused AGNN kernel: per (row-block i, nonzero-neighbor-tile slot jj)
#   jj == 0      : xp_blk = aw * (x_blk @ W)   (cached bf16), zero accumulators
#   jj < cnt[i]  : xp_col = x_col @ W
#                  S = xp_blk @ xp_col.T       (SDDMM, bf16 MXU, f32 acc)
#                  E = where(adj != 0, exp(S), 0)
#                  rows += sum_j E ; acc += E @ xp_col
#   jj == last   : out = acc / rows
# ---------------------------------------------------------------------------
def _agnn_kernel(aw_ref, cnt_ref, cidx_ref,                # scalar prefetch (SMEM)
                 x_blk_ref, x_col_ref, w_ref, adj_ref,     # inputs (VMEM tiles)
                 o_ref,                                     # output tile
                 xp_blk_ref, acc_ref, rows_ref):            # VMEM scratch
    i = pl.program_id(0)
    jj = pl.program_id(1)

    # First neighbor-tile slot of this row block: project the row block through
    # W once (X @ W fused), fold attention_w in, and zero the accumulators.
    @pl.when(jj == 0)
    def _():
        xp = jnp.dot(x_blk_ref[...], w_ref[...],
                     preferred_element_type=jnp.float32)
        xp_blk_ref[...] = (aw_ref[0] * xp).astype(jnp.bfloat16)
        acc_ref[...] = jnp.zeros_like(acc_ref)
        rows_ref[...] = jnp.zeros_like(rows_ref)

    # Only real (nonzero) adjacency tiles do work; padded slots of the ragged
    # tile list repeat the previous block index (no extra DMA) and are skipped.
    @pl.when(jj < cnt_ref[i])
    def _():
        # Project the neighbor (column) tile through W (fused X @ W, bf16 MXU).
        xp_col = jnp.dot(x_col_ref[...], w_ref[...],
                         preferred_element_type=jnp.float32
                         ).astype(jnp.bfloat16)                        # (tn, Dp)

        # SDDMM pairwise scores; attention_w is already folded into xp_blk.
        s = jax.lax.dot_general(
            xp_blk_ref[...], xp_col, (((1,), (1,)), ((), ())),
            preferred_element_type=jnp.float32)                        # (tm, tn)

        # Edge attention exp(att), masked to real edges.  jnp.where avoids
        # 0 * inf -> NaN on masked-off entries.
        # TODO(synk): no max-subtraction before exp, same as the reference
        # CUDA op; assumes exp(attention_w * score) stays within f32 range.
        e = jnp.where(adj_ref[...] != 0, jnp.exp(s), 0.0)              # (tm, tn) f32

        # rows_sum partial = SpMM(att, ones); h partial = SpMM(att, X_prime).
        rows_ref[...] += jnp.sum(e, axis=-1, keepdims=True)
        acc_ref[...] += jnp.dot(e.astype(jnp.bfloat16), xp_col,
                                preferred_element_type=jnp.float32)

    # Last tile slot: normalize (exact divide, once per row block) and write
    # the lane-dense output block.
    @pl.when(jj == pl.num_programs(1) - 1)
    def _():
        o_ref[...] = (acc_ref[...] / rows_ref[...]).astype(o_ref.dtype)


# ---------------------------------------------------------------------------
# Host-side block-CSR metadata (the analogue of Libra's inputInfo tensors).
# ---------------------------------------------------------------------------
def _block_csr_metadata(adj_np, n_pad, tm, tn):
    """Per row block: count and list of column-tile indices that hold at least
    one edge.  Padded slots repeat the last valid index so the already-resident
    tile is re-used (pipelining skips the DMA) and pl.when skips the compute."""
    nbr, nbc = n_pad // tm, n_pad // tn
    a = np.zeros((n_pad, n_pad), dtype=bool)
    a[:adj_np.shape[0], :adj_np.shape[1]] = adj_np != 0
    blk_nz = a.reshape(nbr, tm, nbc, tn).any(axis=(1, 3))              # (nbr, nbc)
    counts = blk_nz.sum(axis=1).astype(np.int32)                       # (nbr,)
    max_t = max(1, int(counts.max()))
    col_idx = np.zeros((nbr, max_t), dtype=np.int32)
    for i in range(nbr):
        nz = np.nonzero(blk_nz[i])[0].astype(np.int32)
        if nz.size:
            col_idx[i, :nz.size] = nz
            col_idx[i, nz.size:] = nz[-1]
    return counts, col_idx.reshape(-1), max_t


# ---------------------------------------------------------------------------
# AGNNConv forward wrapper
# ---------------------------------------------------------------------------
def agnn_conv_forward(x, weights, attention_w, adj, *, tm=256, tn=2048):
    """x: (N, Din), weights: (Din, Dout), attention_w: (1,),
    adj: (N, N) dense 0/1 edge mask (self-loops expected, as in the reference).

    tm / tn: row-block / neighbor-tile sizes.  Defaults amortize per-grid-step
    overhead; double-buffered VMEM at the defaults is ~2 MiB (adj 2*tm*tn*1B +
    x_col 2*tn*Din*2B + out/acc 2*tm*Dp*4B), independent of N.  Graph structure
    is preprocessed on the host into block-CSR metadata, so `adj` must be a
    concrete (non-traced) array — same role as the module's `inputInfo`.
    """
    n, din = x.shape
    dout = weights.shape[1]

    # Lane-dense output feature dim (multiple of 128).  Zero-padded W columns
    # do not change scores or aggregates; sliced off at the end.
    d_pad = ((dout + 127) // 128) * 128

    # ---- tile sizes ---------------------------------------------------------
    n_pad = ((n + 127) // 128) * 128
    tn = min(tn, n_pad)
    while n_pad % tn:
        tn -= 128                    # keep tn a multiple of 128 that divides n_pad
    tm = min(tm, n_pad)
    while n_pad % tm:
        tm -= 32                     # keep tm a multiple of 32 that divides n_pad
    if n_pad // tm < 2:
        tm = n_pad // 2              # >=2 row blocks keeps both v7x TCs busy
    nbr = n_pad // tm

    # ---- host-side block-CSR metadata (skips all-zero adjacency tiles) ------
    counts_np, col_idx_np, max_t = _block_csr_metadata(
        np.asarray(adj), n_pad, tm, tn)

    # ---- operand preparation ------------------------------------------------
    x_bf16 = jnp.asarray(x, jnp.bfloat16)
    if n_pad != n:
        x_bf16 = jnp.pad(x_bf16, ((0, n_pad - n), (0, 0)))
        adj = jnp.pad(adj, ((0, n_pad - n), (0, n_pad - n)))
    w_pad = jnp.zeros((din, d_pad), jnp.bfloat16).at[:, :dout].set(
        jnp.asarray(weights, jnp.bfloat16))
    adj_i8 = (adj != 0).astype(jnp.int8)          # only O(N^2) stream: 1 B/elem
    aw = jnp.asarray(attention_w, jnp.float32).reshape((1,))
    counts = jnp.asarray(counts_np)               # (nbr,) int32
    col_idx = jnp.asarray(col_idx_np)             # (nbr*max_t,) int32, flat SMEM

    grid = (nbr, max_t)   # (row blocks, ragged nonzero-tile slots)

    out = pl.pallas_call(
        _agnn_kernel,
        out_shape=jax.ShapeDtypeStruct((n_pad, d_pad), jnp.float32),
        grid_spec=pltpu.PrefetchScalarGridSpec(
            num_scalar_prefetch=3,   # attention_w, per-block tile counts, tile ids
            grid=grid,
            in_specs=[
                # X rows of this row block.
                pl.BlockSpec((tm, din),
                             lambda i, jj, aw, cnt, cidx: (i, 0)),
                # X rows of the jj-th nonzero neighbor tile of row block i.
                pl.BlockSpec((tn, din),
                             lambda i, jj, aw, cnt, cidx:
                             (cidx[i * max_t + jj], 0)),
                # W (full, lane-dense).
                pl.BlockSpec((din, d_pad),
                             lambda i, jj, aw, cnt, cidx: (0, 0)),
                # Adjacency tile (row block i, nonzero column tile).
                pl.BlockSpec((tm, tn),
                             lambda i, jj, aw, cnt, cidx:
                             (i, cidx[i * max_t + jj])),
            ],
            out_specs=pl.BlockSpec((tm, d_pad),
                                   lambda i, jj, aw, cnt, cidx: (i, 0)),
            scratch_shapes=[
                pltpu.VMEM((tm, d_pad), jnp.bfloat16),  # aw * (X_blk @ W), cached
                pltpu.VMEM((tm, d_pad), jnp.float32),   # h_prime accumulator
                pltpu.VMEM((tm, 1), jnp.float32),       # rows_sum accumulator
            ],
        ),
        compiler_params=pltpu.CompilerParams(
            # Row axis parallel (shards across v7x's two TCs); the ragged
            # neighbor-tile axis is a reduction -> "arbitrary".
            dimension_semantics=("parallel", "arbitrary"),
        ),
    )(aw, counts, col_idx, x_bf16, x_bf16, w_pad, adj_i8)

    return out[:n, :dout]


def init_params(key, input_dim, output_dim):
    k_w, k_a = jax.random.split(key)
    stdv = 1.0 / math.sqrt(output_dim)
    weights = jax.random.uniform(
        k_w, (input_dim, output_dim), jnp.float32, minval=-stdv, maxval=stdv
    )
    attention_w = jax.random.normal(k_a, (1,), jnp.float32)
    return weights, attention_w


if __name__ == "__main__":
    key = jax.random.PRNGKey(0)
    k_x, k_adj, k_param = jax.random.split(key, 3)

    num_nodes = 256
    input_dim = 32
    output_dim = 32

    # Node features.
    x = jax.random.normal(k_x, (num_nodes, input_dim), jnp.float32)

    # Deterministic random sparse graph as a dense 0/1 mask, self-loops included
    # so every row_sum is nonzero (same assumption as the reference CUDA op).
    adj = (jax.random.uniform(k_adj, (num_nodes, num_nodes)) < 0.1).astype(jnp.float32)
    adj = jnp.clip(adj + jnp.eye(num_nodes, dtype=jnp.float32), 0.0, 1.0)

    weights, attention_w = init_params(k_param, input_dim, output_dim)

    h_prime = agnn_conv_forward(x, weights, attention_w, adj)
    jax.block_until_ready(h_prime)

    # Pure-JAX f32 reference.  The kernel uses bf16 MXU operands with f32
    # accumulation (per perf review), so the tolerance is loosened accordingly.
    x_prime_ref = x @ weights
    s_ref = x_prime_ref @ x_prime_ref.T
    e_ref = jnp.where(adj != 0, jnp.exp(attention_w[0] * s_ref), 0.0)
    h_ref = (e_ref @ x_prime_ref) / jnp.sum(e_ref, axis=-1, keepdims=True)

    assert jnp.allclose(h_prime, h_ref, rtol=1e-1, atol=1e-1), "mismatch vs reference"

    print("KERNEL_OK")
</pallas_src>

<mosaic_0001>
module attributes {stable_mosaic.version = 11 : i64} {
  func.func @_agnn_kernel(%arg0: i32, %arg1: i32, %arg2: memref<1xf32, #tpu.memory_space<smem>>, %arg3: memref<2xi32, #tpu.memory_space<smem>>, %arg4: memref<2xi32, #tpu.memory_space<smem>>, %arg5: memref<128x32xbf16, #tpu.memory_space<vmem>>, %arg6: memref<256x32xbf16, #tpu.memory_space<vmem>>, %arg7: memref<32x128xbf16, #tpu.memory_space<vmem>>, %arg8: memref<128x256xi8, #tpu.memory_space<vmem>>, %arg9: memref<128x128xf32, #tpu.memory_space<vmem>>, %arg10: memref<128x128xbf16, #tpu.memory_space<vmem>>, %arg11: memref<128x128xf32, #tpu.memory_space<vmem>>, %arg12: memref<128x1xf32, #tpu.memory_space<vmem>>) attributes {dimension_semantics = [#tpu.dimension_semantics<parallel>, #tpu.dimension_semantics<arbitrary>], iteration_bounds = array<i64: 2, 1>, scalar_prefetch = 3 : i64, scratch_operands = 3 : i64, tpu.core_type = #tpu.core_type<tc>, window_params = [{transform_indices = @transform_0, window_bounds = array<i64: 128, 32>}, {transform_indices = @transform_1, window_bounds = array<i64: 256, 32>}, {pipeline_mode = #tpu.pipeline_mode<synchronous>, transform_indices = @transform_2, window_bounds = array<i64: 32, 128>}, {transform_indices = @transform_3, window_bounds = array<i64: 128, 256>}, {transform_indices = @transform_4, window_bounds = array<i64: 128, 128>}]} {
    %c0_i32 = arith.constant 0 : i32
    %0 = arith.cmpi eq, %arg1, %c0_i32 : i32
    %1 = arith.extui %0 : i1 to i32
    %c0_i32_0 = arith.constant 0 : i32
    %2 = arith.cmpi ne, %1, %c0_i32_0 : i32
    scf.if %2 {
      %c0 = arith.constant 0 : index
      %c0_4 = arith.constant 0 : index
      %11 = vector.load %arg5[%c0, %c0_4] : memref<128x32xbf16, #tpu.memory_space<vmem>>, vector<128x32xbf16>
      %c0_5 = arith.constant 0 : index
      %c0_6 = arith.constant 0 : index
      %12 = vector.load %arg7[%c0_5, %c0_6] : memref<32x128xbf16, #tpu.memory_space<vmem>>, vector<32x128xbf16>
      %cst = arith.constant dense<0.000000e+00> : vector<128x128xf32>
      %13 = tpu.matmul %11, %12, %cst {dimension_numbers = #tpu.dot_dimension_numbers<[1], [0], [0], [1], [0, 0, 1, 1], [], []>} : vector<128x32xbf16>, vector<32x128xbf16>, vector<128x128xf32> -> vector<128x128xf32>
      %c0_7 = arith.constant 0 : index
      %14 = memref.load %arg2[%c0_7] : memref<1xf32, #tpu.memory_space<smem>>
      %15 = vector.broadcast %14 : f32 to vector<128x128xf32>
      %16 = arith.mulf %15, %13 : vector<128x128xf32>
      %17 = arith.truncf %16 : vector<128x128xf32> to vector<128x128xbf16>
      %c0_8 = arith.constant 0 : index
      %c0_9 = arith.constant 0 : index
      %18 = vector.load %arg10[%c0_8, %c0_9] : memref<128x128xbf16, #tpu.memory_space<vmem>>, vector<128x128xbf16>
      tpu.vector_store %arg10[%c0_8, %c0_9], %17 {strides = array<i32>} : memref<128x128xbf16, #tpu.memory_space<vmem>>, vector<128x128xbf16>,
      %cst_10 = arith.constant 0.000000e+00 : f32
      %19 = vector.broadcast %cst_10 : f32 to vector<128x128xf32>
      %c0_11 = arith.constant 0 : index
      %c0_12 = arith.constant 0 : index
      %20 = vector.load %arg11[%c0_11, %c0_12] : memref<128x128xf32, #tpu.memory_space<vmem>>, vector<128x128xf32>
      tpu.vector_store %arg11[%c0_11, %c0_12], %19 {strides = array<i32>} : memref<128x128xf32, #tpu.memory_space<vmem>>, vector<128x128xf32>,
      %cst_13 = arith.constant 0.000000e+00 : f32
      %21 = vector.broadcast %cst_13 : f32 to vector<128x1xf32>
      %c0_14 = arith.constant 0 : index
      %c0_15 = arith.constant 0 : index
      %22 = vector.load %arg12[%c0_14, %c0_15] : memref<128x1xf32, #tpu.memory_space<vmem>>, vector<128x1xf32>
      tpu.vector_store %arg12[%c0_14, %c0_15], %21 {strides = array<i32>} : memref<128x1xf32, #tpu.memory_space<vmem>>, vector<128x1xf32>,
    } else {
    }
    %3 = arith.index_cast %arg0 : i32 to index
    %4 = memref.load %arg3[%3] : memref<2xi32, #tpu.memory_space<smem>>
    %5 = arith.cmpi slt, %arg1, %4 : i32
    %6 = arith.extui %5 : i1 to i32
    %c0_i32_1 = arith.constant 0 : i32
    %7 = arith.cmpi ne, %6, %c0_i32_1 : i32
    scf.if %7 {
      %c0 = arith.constant 0 : index
      %c0_4 = arith.constant 0 : index
      %11 = vector.load %arg6[%c0, %c0_4] : memref<256x32xbf16, #tpu.memory_space<vmem>>, vector<256x32xbf16>
      %c0_5 = arith.constant 0 : index
      %c0_6 = arith.constant 0 : index
      %12 = vector.load %arg7[%c0_5, %c0_6] : memref<32x128xbf16, #tpu.memory_space<vmem>>, vector<32x128xbf16>
      %cst = arith.constant dense<0.000000e+00> : vector<256x128xf32>
      %13 = tpu.matmul %11, %12, %cst {dimension_numbers = #tpu.dot_dimension_numbers<[1], [0], [0], [1], [0, 0, 1, 1], [], []>} : vector<256x32xbf16>, vector<32x128xbf16>, vector<256x128xf32> -> vector<256x128xf32>
      %14 = arith.truncf %13 : vector<256x128xf32> to vector<256x128xbf16>
      %c0_7 = arith.constant 0 : index
      %c0_8 = arith.constant 0 : index
      %15 = vector.load %arg10[%c0_7, %c0_8] : memref<128x128xbf16, #tpu.memory_space<vmem>>, vector<128x128xbf16>
      %cst_9 = arith.constant dense<0.000000e+00> : vector<128x256xf32>
      %16 = tpu.matmul %15, %14, %cst_9 {dimension_numbers = #tpu.dot_dimension_numbers<[1], [1], [0], [0], [0, 0, 1, 0], [], []>} : vector<128x128xbf16>, vector<256x128xbf16>, vector<128x256xf32> -> vector<128x256xf32>
      %c0_10 = arith.constant 0 : index
      %c0_11 = arith.constant 0 : index
      %17 = vector.load %arg8[%c0_10, %c0_11] : memref<128x256xi8, #tpu.memory_space<vmem>>, vector<128x256xi8>
      %c0_i8 = arith.constant 0 : i8
      %18 = vector.broadcast %c0_i8 : i8 to vector<128x256xi8>
      %19 = arith.cmpi ne, %17, %18 : vector<128x256xi8>
      %20 = math.exp %16 : vector<128x256xf32>
      %cst_12 = arith.constant 0.000000e+00 : f32
      %21 = vector.broadcast %cst_12 : f32 to vector<128x256xf32>
      %22 = arith.select %19, %20, %21 : vector<128x256xi1>, vector<128x256xf32>
      %c0_13 = arith.constant 0 : index
      %c0_14 = arith.constant 0 : index
      %23 = vector.load %arg12[%c0_13, %c0_14] : memref<128x1xf32, #tpu.memory_space<vmem>>, vector<128x1xf32>
      %cst_15 = arith.constant dense<0.000000e+00> : vector<128xf32>
      %24 = vector.multi_reduction <add>, %22, %cst_15 [1] : vector<128x256xf32> to vector<128xf32>
      %25 = vector.shape_cast %24 : vector<128xf32> to vector<128x1xf32>
      %26 = arith.addf %23, %25 : vector<128x1xf32>
      %c0_16 = arith.constant 0 : index
      %c0_17 = arith.constant 0 : index
      %27 = vector.load %arg12[%c0_16, %c0_17] : memref<128x1xf32, #tpu.memory_space<vmem>>, vector<128x1xf32>
      tpu.vector_store %arg12[%c0_16, %c0_17], %26 {strides = array<i32>} : memref<128x1xf32, #tpu.memory_space<vmem>>, vector<128x1xf32>,
      %c0_18 = arith.constant 0 : index
      %c0_19 = arith.constant 0 : index
      %28 = vector.load %arg11[%c0_18, %c0_19] : memref<128x128xf32, #tpu.memory_space<vmem>>, vector<128x128xf32>
      %29 = arith.truncf %22 : vector<128x256xf32> to vector<128x256xbf16>
      %cst_20 = arith.constant dense<0.000000e+00> : vector<128x128xf32>
      %30 = tpu.matmul %29, %14, %cst_20 {dimension_numbers = #tpu.dot_dimension_numbers<[1], [0], [0], [1], [0, 0, 1, 1], [], []>} : vector<128x256xbf16>, vector<256x128xbf16>, vector<128x128xf32> -> vector<128x128xf32>
      %31 = arith.addf %28, %30 : vector<128x128xf32>
      %c0_21 = arith.constant 0 : index
      %c0_22 = arith.constant 0 : index
      %32 = vector.load %arg11[%c0_21, %c0_22] : memref<128x128xf32, #tpu.memory_space<vmem>>, vector<128x128xf32>
      tpu.vector_store %arg11[%c0_21, %c0_22], %31 {strides = array<i32>} : memref<128x128xf32, #tpu.memory_space<vmem>>, vector<128x128xf32>,
    } else {
    }
    %c0_i32_2 = arith.constant 0 : i32
    %8 = arith.cmpi eq, %arg1, %c0_i32_2 : i32
    %9 = arith.extui %8 : i1 to i32
    %c0_i32_3 = arith.constant 0 : i32
    %10 = arith.cmpi ne, %9, %c0_i32_3 : i32
    scf.if %10 {
      %c0 = arith.constant 0 : index
      %c0_4 = arith.constant 0 : index
      %11 = vector.load %arg11[%c0, %c0_4] : memref<128x128xf32, #tpu.memory_space<vmem>>, vector<128x128xf32>
      %c0_5 = arith.constant 0 : index
      %c0_6 = arith.constant 0 : index
      %12 = vector.load %arg12[%c0_5, %c0_6] : memref<128x1xf32, #tpu.memory_space<vmem>>, vector<128x1xf32>
      %13 = vector.broadcast %12 : vector<128x1xf32> to vector<128x128xf32>
      %14 = arith.divf %11, %13 : vector<128x128xf32>
      %c0_7 = arith.constant 0 : index
      %c0_8 = arith.constant 0 : index
      %15 = vector.load %arg9[%c0_7, %c0_8] : memref<128x128xf32, #tpu.memory_space<vmem>>, vector<128x128xf32>
      tpu.vector_store %arg9[%c0_7, %c0_8], %14 {strides = array<i32>} : memref<128x128xf32, #tpu.memory_space<vmem>>, vector<128x128xf32>,
    } else {
    }
    return
  }
  func.func @transform_0(%arg0: i32, %arg1: i32, %arg2: memref<1xf32, #tpu.memory_space<smem>>, %arg3: memref<2xi32, #tpu.memory_space<smem>>, %arg4: memref<2xi32, #tpu.memory_space<smem>>) -> (i32, i32) {
    %c0_i32 = arith.constant 0 : i32
    %c0_i32_0 = arith.constant 0 : i32
    return %arg0, %c0_i32 : i32, i32
  }
  func.func @transform_1(%arg0: i32, %arg1: i32, %arg2: memref<1xf32, #tpu.memory_space<smem>>, %arg3: memref<2xi32, #tpu.memory_space<smem>>, %arg4: memref<2xi32, #tpu.memory_space<smem>>) -> (i32, i32) {
    %c1_i32 = arith.constant 1 : i32
    %0 = arith.muli %arg0, %c1_i32 : i32
    %1 = arith.addi %0, %arg1 : i32
    %2 = arith.index_cast %1 : i32 to index
    %3 = memref.load %arg4[%2] : memref<2xi32, #tpu.memory_space<smem>>
    %c0_i32 = arith.constant 0 : i32
    %c0_i32_0 = arith.constant 0 : i32
    return %3, %c0_i32 : i32, i32
  }
  func.func @transform_2(%arg0: i32, %arg1: i32, %arg2: memref<1xf32, #tpu.memory_space<smem>>, %arg3: memref<2xi32, #tpu.memory_space<smem>>, %arg4: memref<2xi32, #tpu.memory_space<smem>>) -> (i32, i32) {
    %c0_i32 = arith.constant 0 : i32
    %c0_i32_0 = arith.constant 0 : i32
    %c0_i32_1 = arith.constant 0 : i32
    return %c0_i32, %c0_i32_0 : i32, i32
  }
  func.func @transform_3(%arg0: i32, %arg1: i32, %arg2: memref<1xf32, #tpu.memory_space<smem>>, %arg3: memref<2xi32, #tpu.memory_space<smem>>, %arg4: memref<2xi32, #tpu.memory_space<smem>>) -> (i32, i32) {
    %c1_i32 = arith.constant 1 : i32
    %0 = arith.muli %arg0, %c1_i32 : i32
    %1 = arith.addi %0, %arg1 : i32
    %2 = arith.index_cast %1 : i32 to index
    %3 = memref.load %arg4[%2] : memref<2xi32, #tpu.memory_space<smem>>
    %c0_i32 = arith.constant 0 : i32
    return %arg0, %3 : i32, i32
  }
  func.func @transform_4(%arg0: i32, %arg1: i32, %arg2: memref<1xf32, #tpu.memory_space<smem>>, %arg3: memref<2xi32, #tpu.memory_space<smem>>, %arg4: memref<2xi32, #tpu.memory_space<smem>>) -> (i32, i32) {
    %c0_i32 = arith.constant 0 : i32
    %c0_i32_0 = arith.constant 0 : i32
    return %arg0, %c0_i32 : i32, i32
  }
}

</mosaic_0001>

<bundles_post_ra>
// kernel: tpu_custom_call.1
= control target key start
LH: loop header
LB: loop body
LE: loop exit
PB: predicated region body
PF: predicated region fallthrough
CT: control target
= control target key end

     0   :  { %s3228_s0 = inlined_call_operand.<no memory space> [shape: f32[1], index: 0, kind: input, shape index: {}]   ;;  %s3229_s1 = inlined_call_operand.vmem [shape: s32[2], index: 1, kind: input, shape index: {}]   ;;  %s3230_s3 = inlined_call_operand.vmem [shape: bf16[256,32], index: 3, kind: input, shape index: {}]   ;;  %s3231_s4 = inlined_call_operand.vmem [shape: bf16[256,32], index: 4, kind: input, shape index: {}]   ;;  %s3232_s5 = inlined_call_operand.vmem [shape: bf16[32,128], index: 5, kind: input, shape index: {}]   ;;  %s3233_s6 = inlined_call_operand.vmem [shape: s8[256,256], index: 6, kind: input, shape index: {}]   ;;  %s3234_s7 = inlined_call_operand.hbm [shape: f32[256,128], index: 7, kind: output, shape index: {}]   ;;  %s3235_s2 = inlined_call_operand.vmem [shape: s32[2], index: 2, kind: input, shape index: {}]  }
   0x1   :  { %12 = sst [smem:[#allocation6]] %s3228_s0  ;;  %s13_s28 = sshll.u32 %s3229_s1, 4  ;;  %s14_s28 = int_to_ptr.vmem [resolvable:$true] %s13_s28 }
   0x2   :  { %s17_s8 = sshll.u32 %s3235_s2, 4  ;;  %s2373_s9 = scalar_lea.vmem %s14_s28, 16  ;;  %s18_s8 = int_to_ptr.vmem [resolvable:$true] %s17_s8 }
   0x3   :  { %p2374_p0 = scmp.ne.s32.totalorder %s14_s28, %s2373_s9  ;;  %p2378_p1 = scmp.lt.s32.totalorder %s14_s28, %s14_s28 }
   0x4   :  { %p2379_p2 = scmp.lt.s32.totalorder %s2373_s9, %s2373_s9 }
   0x6   :  { %p2380_p3 = por %p2379_p2, %p2378_p1 }
   0x8   :  { %p2381_p4 = pnand %p2380_p3, %p2374_p0 }
   0xa   :  { %2384 = shalt.err (!%p2381_p4)  }
   0xb   :  { %s2479_s10 = smov [#allocation7]   ;;  %s2385_s0 = scalar_lea.vmem %s18_s8, 16 }
   0xc   :  { %16 = dma.vmem_to_smem %s14_s28, 16, %s2479_s10, [#allocation5] }
   0xd   :  { %p2386_p5 = scmp.ne.s32.totalorder %s18_s8, %s2385_s0  ;;  %p2390_p6 = scmp.lt.s32.totalorder %s18_s8, %s18_s8 }
   0xe   :  { %p2391_p7 = scmp.lt.s32.totalorder %s2385_s0, %s2385_s0 }
  0x10   :  { %p2392_p8 = por %p2391_p7, %p2390_p6 }
  0x12   :  { %p2393_p9 = pnand %p2392_p8, %p2386_p5 }
  0x14   :  { %2396 = shalt.err (!%p2393_p9)  }
  0x15   :  { %s2480_s1 = smov [#allocation8]  }
  0x16   :  { %20 = dma.vmem_to_smem %s18_s8, 16, %s2480_s1, [#allocation5] }
  0x17   :  { %2449 = dma.done.wait [#allocation5], 32 }
  0x18   :  { %2450 = vsyncadd [#allocation5], 4294967264 }
  0x19   :  { %22 = sfence }
  0x1a   :  { %23 = vsyncpa [#allocation10], 0 }
  0x1b   :  { %25 = vsyncpa [#allocation10 + $0x1], 0  ;;  %s2536_s2 = smov 0   ;;  %s2538_s11 = smov 0  }
  0x1c   :  { %s2540_s12 = smov 0   ;;  %s2542_s13 = smov 0  }
  0x1d   :  { %s2544_s14 = smov 0   ;;  %s2546_s15 = smov 0  }
  0x1e LB: > { %3239 = sst [smem:[#allocation13_spill]] %s2473_s14  ;;  %s1879_s16 = sadd.s32 4294967295, %s2477_s15   ;;  %s2477_s15 = sphi %s2546_s15, %s31_s15   ;;  %s2473_s14 = sphi %s2544_s14, %s3329_s14   ;;  %s2469_s13 = sphi %s2542_s13, %s3328_s13   ;;  %s2465_s12 = sphi %s2540_s12, %s3332_s12   ;;  %s2461_s11 = sphi %s2538_s11, %s3331_s11   ;;  %s2457_s2 = sphi %s2536_s2, %s3330_s2  }
  0x1f   : > { %s1880_s17 = sadd.s32 4294967294, %s2477_s15   ;;  %s43_s18 = sadd.s32 1, %s2473_s14 }
  0x20   : > { %s159_s19 = sadd.s32 1, %s2465_s12  ;;  %p45_p10 = scmp.ge.s32.totalorder %s43_s18, 2 }
  0x21   : > { %p169_p11 = scmp.ne.s32.totalorder %s2465_s12, %s2461_s11  ;;  %p170_p12 = scmp.eq.s32.totalorder %s1879_s16, 1 }
  0x22   : > { %p175_p13 = scmp.ne.s32.totalorder %s2461_s11, %s2457_s2  ;;  %s3334_s18 = smov (%p45_p10, %s43_s18), 0 }
  0x23   : > { %3240 = sst [smem:[#allocation14_spill]] %s3334_s18  ;;  %p2576_p0 = por %p170_p12, %p169_p11 }
  0x24   : > { %p176_p1 = scmp.eq.s32.totalorder %s1880_s17, 1  ;;  %s156_s21 = ssub.s32 %s2473_s14, %s3334_s18 }
  0x25   : > { %p1883_p2 = scmp.ge.s32.totalorder %s2477_s15, 1  ;;  %p157_p3 = scmp.eq.s32.totalorder %s156_s21, 0 }
  0x26   : > { %p2583_p4 = por %p176_p1, %p175_p13  ;;  %p238_p5 = scmp.lt.s32.totalorder %s2477_s15, 3 }
  0x27   : > { %s2589_s23 = scalar_select %p157_p3, %s2465_s12, %s159_s19  }
  0x28   : > { %p239_p6 = pnand %p1883_p2, %p238_p5 }
  0x29   : > { %s3236_s24 = sand.u32 (!%p239_p6), 1, %s2461_s11   ;;  %s290_s25 = sld [smem:[#allocation8 + %s2469_s13]] (!%p239_p6)  ;;  %v2247_v0 = vld [vmem:[%s3232_s5] sm:$0xff] (!%p239_p6)   ;;  %v2248_v1 = vld [vmem:[%s3232_s5 + $0x8] sm:$0xff] (!%p239_p6)   ;;  %vm395_vm0 = vcmask (!%p239_p6), 261120   ;;  %vm567_vm1 = vcmask (!%p239_p6), 7168  }
  0x2a   : > { %242 = sbr.rel (%p239_p6) target bundleno = 1279 (0x4ff), region = 36  ;;  %s2595_s26 = sshll.u32 (!%p239_p6), %s3236_s24, 7  ;;  %2125 = vmatprep.subr.bf16.mxu0 (!%p239_p6), %v2247_v0  ;;  %2181 = vmatprep.subr.bf16.mxu1 (!%p239_p6), %v2247_v0  ;;  %v2481_v10 = vmov (!%p239_p6), 0.0  }
  0x2b   : > { %s300_s27 = sld [smem:[#allocation8 + %s2469_s13]] (!%p239_p6)  ;;  %s1889_s9 = sshll.u32 (!%p239_p6), %s2469_s13, 2  ;;  %2126 = vmatpush3.bf16.msra.mxu0 (!%p239_p6), %v2247_v0  ;;  %2183 = vmatpush3.bf16.msra.mxu1 (!%p239_p6), %v2247_v0  ;;  %551 = vst [vmem:[#allocation3] sm:$0xff] (!%p239_p6), %v2481_v10  ;;  %552 = vst [vmem:[#allocation3 + $0x8] sm:$0xff] (!%p239_p6), %v2481_v10 }
  0x2c   : > { %p303_p7 = scmp.lt.s32.totalorder (!%p239_p6), %s1889_s9, 7  ;;  %2127 = vmatprep.subr.bf16.mxu0 (!%p239_p6), %v2248_v1  ;;  %2182 = vmatprep.subr.bf16.mxu1 (!%p239_p6), %v2248_v1  ;;  %s1885_s0 = sshll.u32 (!%p239_p6), %s2469_s13, 4  ;;  %553 = vst [vmem:[#allocation3 + $0x10] sm:$0xff] (!%p239_p6), %v2481_v10  ;;  %554 = vst [vmem:[#allocation3 + $0x18] sm:$0xff] (!%p239_p6), %v2481_v10 }
  0x2d   : > { %p284_p10 = scmp.lt.s32.totalorder (!%p239_p6), %s1885_s0, 31  ;;  %555 = vst [vmem:[#allocation3 + $0x20] sm:$0xff] (!%p239_p6), %v2481_v10  ;;  %556 = vst [vmem:[#allocation3 + $0x28] sm:$0xff] (!%p239_p6), %v2481_v10  ;;  %s517_s18 = sld [smem:[#allocation6]] (!%p239_p6) }
  0x2e   : > { %557 = vst [vmem:[#allocation3 + $0x30] sm:$0xff] (!%p239_p6), %v2481_v10  ;;  %558 = vst [vmem:[#allocation3 + $0x38] sm:$0xff] (!%p239_p6), %v2481_v10 }
  0x2f   : > { %s1887_s10 = sshll.u32 (!%p239_p6), %s290_s25, 5  ;;  %2128 = vmatpush3.bf16.msra.mxu0 (!%p239_p6), %v2248_v1  ;;  %2184 = vmatpush3.bf16.msra.mxu1 (!%p239_p6), %v2248_v1  ;;  %559 = vst [vmem:[#allocation3 + $0x40] sm:$0xff] (!%p239_p6), %v2481_v10  ;;  %560 = vst [vmem:[#allocation3 + $0x48] sm:$0xff] (!%p239_p6), %v2481_v10 }
  0x30   : > { %p292_p8 = scmp.lt.s32.totalorder (!%p239_p6), %s1887_s10, 31  ;;  %561 = vst [vmem:[#allocation3 + $0x50] sm:$0xff] (!%p239_p6), %v2481_v10  ;;  %562 = vst [vmem:[#allocation3 + $0x58] sm:$0xff] (!%p239_p6), %v2481_v10 }
  0x31   : > { %s3336_s9 = smov (!%p303_p7, %s1889_s9), 7  ;;  %s1890_s1 = sshll.u32 %s300_s27, 1  ;;  %563 = vst [vmem:[#allocation3 + $0x60] sm:$0xff] %v2481_v10  ;;  %564 = vst [vmem:[#allocation3 + $0x68] sm:$0xff] %v2481_v10 }
  0x32   : > { %p305_p9 = scmp.lt.s32.totalorder %s1890_s1, 1  ;;  %s1891_s16 = sshll.u32 %s3336_s9, 1  ;;  %565 = vst [vmem:[#allocation3 + $0x70] sm:$0xff] %v2481_v10  ;;  %566 = vst [vmem:[#allocation3 + $0x78] sm:$0xff] %v2481_v10 }
  0x33   : > { %s3338_s10 = smov (!%p292_p8, %s1887_s10), 31  ;;  %s3342_s0 = smov (!%p284_p10, %s1885_s0), 31  ;;  %568 = vst.msk [vmem:[#allocation4] sm:$0xff] %vm567_vm1, %v2481_v10  ;;  %569 = vst.msk [vmem:[#allocation4 + $0x8] sm:$0xff] %vm567_vm1, %v2481_v10  ;;  %v518_v12 = vstv %s517_s18 }
  0x34   : > { %s3340_s1 = smov (!%p305_p9, %s1890_s1), 1  ;;  %s1888_s17 = sshll.u32 %s3338_s10, 2  ;;  %570 = vst.msk [vmem:[#allocation4 + $0x10] sm:$0xff] %vm567_vm1, %v2481_v10  ;;  %571 = vst.msk [vmem:[#allocation4 + $0x18] sm:$0xff] %vm567_vm1, %v2481_v10 }
  0x35   : > { %s2609_s28 = scalar_lea.vmem %s3231_s4, %s1888_s17  ;;  %s308_s29 = sadd.s32 %s1891_s16, %s3340_s1  ;;  %572 = vst.msk [vmem:[#allocation4 + $0x20] sm:$0xff] %vm567_vm1, %v2481_v10  ;;  %573 = vst.msk [vmem:[#allocation4 + $0x28] sm:$0xff] %vm567_vm1, %v2481_v10 }
  0x36   : > { %s1892_s30 = sshll.u32 %s308_s29, 3  ;;  %s1886_s27 = sshll.u32 %s3342_s0, 2  ;;  %574 = vst.msk [vmem:[#allocation4 + $0x30] sm:$0xff] %vm567_vm1, %v2481_v10  ;;  %575 = vst.msk [vmem:[#allocation4 + $0x38] sm:$0xff] %vm567_vm1, %v2481_v10 }
  0x37   : > { %s2614_s24 = scalar_lea.vmem %s3233_s6, %s1892_s30  ;;  %s287_s14 = scalar_lea.vmem %s3230_s3, %s1886_s27  ;;  %576 = vst.msk [vmem:[#allocation4 + $0x40] sm:$0xff] %vm567_vm1, %v2481_v10  ;;  %577 = vst.msk [vmem:[#allocation4 + $0x48] sm:$0xff] %vm567_vm1, %v2481_v10 }
  0x38   : > { %v2249_v2 = vld [vmem:[%s287_s14] sm:$0xff]   ;;  %v2251_v4 = vld [vmem:[%s287_s14 + $0x8] sm:$0xff]   ;;  %v2253_v6 = vld [vmem:[%s287_s14 + $0x10] sm:$0xff]   ;;  %578 = vst.msk [vmem:[#allocation4 + $0x50] sm:$0xff] %vm567_vm1, %v2481_v10  ;;  %s2647_s10 = scalar_lea.vmem [#allocation9], %s2595_s26 }
  0x39   : > { %v2250_v3 = vld [vmem:[%s287_s14 + $0x20] sm:$0xff]   ;;  %2129 = vmatprep.mubr.msk.bf16.mxu0 %vm395_vm0, %v2249_v2  ;;  %v2252_v5 = vld [vmem:[%s287_s14 + $0x28] sm:$0xff]   ;;  %v2254_v7 = vld [vmem:[%s287_s14 + $0x30] sm:$0xff]   ;;  %579 = vst.msk [vmem:[#allocation4 + $0x58] sm:$0xff] %vm567_vm1, %v2481_v10 }
  0x3a   : > { %2137 = vmatprep.mubr.msk.bf16.mxu1 %vm395_vm0, %v2250_v3  ;;  %2130 = vmatmul.mubr.msk.bf16.vlgmr.msra.gmra.mrb[0].mxu0 %vm395_vm0, %v2251_v4  ;;  %v2255_v8 = vld [vmem:[%s287_s14 + $0x18] sm:$0xff]   ;;  %580 = vst.msk [vmem:[#allocation4 + $0x60] sm:$0xff] %vm567_vm1, %v2481_v10  ;;  %581 = vst.msk [vmem:[#allocation4 + $0x68] sm:$0xff] %vm567_vm1, %v2481_v10 }
  0x3b   : > { %2138 = vmatmul.mubr.msk.bf16.vlgmr.msra.gmra.mrb[0].mxu1 %vm395_vm0, %v2252_v5  ;;  %2133 = vmatprep.mubr.msk.bf16.mxu0 %vm395_vm0, %v2253_v6  ;;  %v2256_v9 = vld [vmem:[%s287_s14 + $0x38] sm:$0xff]   ;;  %582 = vst.msk [vmem:[#allocation4 + $0x70] sm:$0xff] %vm567_vm1, %v2481_v10  ;;  %583 = vst.msk [vmem:[#allocation4 + $0x78] sm:$0xff] %vm567_vm1, %v2481_v10  ;;  %s2644_s14 = sld [smem:[#allocation7 + %s2469_s13]] }
  0x3c   : > { %2141 = vmatprep.mubr.msk.bf16.mxu1 %vm395_vm0, %v2254_v7 }
  0x41   : > { %p1912_p11 = scmp.le.s32.totalorder %s2644_s14, 0 }
  0x42   : > { %2134 = vmatmul.mubr.msk.bf16.gmra.mrb[4].mxu0 %vm395_vm0, %v2255_v8  ;;  %v2257_v52 = vld [vmem:[%s3232_s5] sm:$0xff] (!%p1912_p11)   ;;  %v2258_v53 = vld [vmem:[%s3232_s5 + $0x8] sm:$0xff] (!%p1912_p11)   ;;  %v2261_v56 = vld [vmem:[%s2609_s28 + $0x10] sm:$0xff] (!%p1912_p11)  }
  0x43   : > { %2142 = vmatmul.mubr.msk.bf16.gmra.mrb[4].mxu1 %vm395_vm0, %v2256_v9  ;;  %2145 = vmatprep.subr.bf16.mxu0 (!%p1912_p11), %v2257_v52  ;;  %v2259_v54 = vld [vmem:[%s2609_s28] sm:$0xff] (!%p1912_p11)   ;;  %v2260_v55 = vld [vmem:[%s2609_s28 + $0x8] sm:$0xff] (!%p1912_p11)   ;;  %v2262_v57 = vld [vmem:[%s2609_s28 + $0x18] sm:$0xff] (!%p1912_p11)  }
  0x44   : > { %2146 = vmatpush3.bf16.msra.mxu0 (!%p1912_p11), %v2257_v52  ;;  %2149 = vmatprep.mubr.msk.bf16.mxu0 (!%p1912_p11), %vm395_vm0, %v2259_v54  ;;  %v2263_v58 = vld [vmem:[%s2609_s28 + $0x20] sm:$0xff] (!%p1912_p11)   ;;  %v2264_v59 = vld [vmem:[%s2609_s28 + $0x28] sm:$0xff] (!%p1912_p11)   ;;  %v2265_v60 = vld [vmem:[%s2609_s28 + $0x30] sm:$0xff] (!%p1912_p11)  }
  0x45   : > { %2147 = vmatprep.subr.bf16.mxu0 (!%p1912_p11), %v2258_v53  ;;  %v2266_v61 = vld [vmem:[%s2609_s28 + $0x38] sm:$0xff] (!%p1912_p11)   ;;  %v2267_v62 = vld [vmem:[%s2609_s28 + $0x40] sm:$0xff] (!%p1912_p11)   ;;  %v2268_v63 = vld [vmem:[%s2609_s28 + $0x48] sm:$0xff] (!%p1912_p11)  }
  0x46   : > { %v2269_v0 = vld [vmem:[%s2609_s28 + $0x50] sm:$0xff] (!%p1912_p11)   ;;  %v2270_v1 = vld [vmem:[%s2609_s28 + $0x58] sm:$0xff] (!%p1912_p11)   ;;  %v2271_v2 = vld [vmem:[%s2609_s28 + $0x60] sm:$0xff] (!%p1912_p11)  }
  0x47   : > { %v2272_v3 = vld [vmem:[%s2609_s28 + $0x68] sm:$0xff] (!%p1912_p11)   ;;  %v2273_v4 = vld [vmem:[%s2609_s28 + $0x70] sm:$0xff] (!%p1912_p11)   ;;  %v2274_v5 = vld [vmem:[%s2609_s28 + $0x78] sm:$0xff] (!%p1912_p11)  }
  0x48   : > { %2148 = vmatpush3.bf16.msra.mxu0 (!%p1912_p11), %v2258_v53 }
 0x10d   : > { %v2131_v11 = vpop.f32.mrb[0].mxu0 }
 0x10e   : > { %v2139_v13 = vpop.f32.mrb[0].mxu1  ;;  %v454_v14 = vpop.f32.mrb[1].mxu0  ;;  %v521_v17 = vmul.f32 %v2131_v11, %v518_v12 }
 0x10f   : > { %v486_v15 = vpop.f32.mrb[1].mxu1  ;;  %v2132_v16 = vpop.f32.mrb[2].mxu0  ;;  %v529_v21 = vmul.f32 %v2139_v13, %v518_v12  ;;  %v519_v22 = vmul.f32 %v518_v12, %v454_v14 }
 0x110   : > { %v522_v18 = vmul.f32 %v2132_v16, %v518_v12  ;;  %v2140_v19 = vpop.f32.mrb[2].mxu1  ;;  %v457_v20 = vpop.f32.mrb[3].mxu0  ;;  %v527_v26 = vmul.f32 %v518_v12, %v486_v15  ;;  %2150 = vmatmul.mubr.msk.bf16.vlgmr.msra.gmra.mrb[0].mxu0 (!%p1912_p11), %vm395_vm0, %v2260_v55 }
 0x111   : > { %v530_v23 = vmul.f32 %v2140_v19, %v518_v12  ;;  %v520_v24 = vmul.f32 %v518_v12, %v457_v20  ;;  %v489_v25 = vpop.f32.mrb[3].mxu1  ;;  %2153 = vmatprep.mubr.msk.bf16.mxu0 (!%p1912_p11), %vm395_vm0, %v2261_v56 }
 0x112   : > { %v536_v27 = vpack.c.bf16 %v522_v18, %v521_v17  ;;  %v528_v28 = vmul.f32 %v518_v12, %v489_v25 }
 0x113   : > { %v540_v29 = vpack.c.bf16 %v530_v23, %v529_v21  ;;  %v535_v30 = vpack.c.bf16 %v520_v24, %v519_v22 }
 0x114   : > { %544 = vst [vmem:[#allocation2 + $0x8] sm:$0xff] %v536_v27  ;;  %v539_v31 = vpack.c.bf16 %v528_v28, %v527_v26 }
 0x115   : > { %548 = vst [vmem:[#allocation2 + $0x28] sm:$0xff] %v540_v29  ;;  %543 = vst [vmem:[#allocation2] sm:$0xff] %v535_v30  ;;  %v2135_v32 = vpop.f32.mrb[4].mxu0 }
 0x116   : > { %547 = vst [vmem:[#allocation2 + $0x20] sm:$0xff] %v539_v31  ;;  %v2143_v33 = vpop.f32.mrb[4].mxu1  ;;  %v470_v34 = vpop.f32.mrb[5].mxu0  ;;  %v525_v37 = vmul.f32 %v2135_v32, %v518_v12 }
 0x117   : > { %v502_v35 = vpop.f32.mrb[5].mxu1  ;;  %v2136_v36 = vpop.f32.mrb[6].mxu0  ;;  %v533_v41 = vmul.f32 %v2143_v33, %v518_v12  ;;  %v523_v42 = vmul.f32 %v518_v12, %v470_v34 }
 0x118   : > { %v526_v38 = vmul.f32 %v2136_v36, %v518_v12  ;;  %v2144_v39 = vpop.f32.mrb[6].mxu1  ;;  %v473_v40 = vpop.f32.mrb[7].mxu0  ;;  %v531_v46 = vmul.f32 %v518_v12, %v502_v35  ;;  %588 = sbr.rel (%p1912_p11) target bundleno = 1092 (0x444), region = 44  ;;  %2154 = vmatmul.mubr.msk.bf16.gmra.mrb[4].mxu0 (!%p1912_p11), %vm395_vm0, %v2262_v57 }
 0x119   : > { %v534_v43 = vmul.f32 %v2144_v39, %v518_v12  ;;  %v524_v44 = vmul.f32 %v518_v12, %v473_v40  ;;  %v505_v45 = vpop.f32.mrb[7].mxu1  ;;  %2157 = vmatprep.mubr.msk.bf16.mxu0 (!%p1912_p11), %vm395_vm0, %v2263_v58 }
 0x11a   : > { %v538_v47 = vpack.c.bf16 %v526_v38, %v525_v37  ;;  %v532_v48 = vmul.f32 %v518_v12, %v505_v45 }
 0x11b   : > { %v542_v49 = vpack.c.bf16 %v534_v43, %v533_v41  ;;  %v537_v50 = vpack.c.bf16 %v524_v44, %v523_v42  ;;  %v944_v55 = vld [vmem:[#allocation2 + $0x8] sm:$0xff] (!%p1912_p11) }
 0x11c   : > { %546 = vst [vmem:[#allocation2 + $0x18] sm:$0xff] %v538_v47  ;;  %v541_v51 = vpack.c.bf16 %v532_v48, %v531_v46  ;;  %v2688_v6 = vld [vmem:[#allocation2] sm:$0xff] (!%p1912_p11) }
 0x11d   : > { %550 = vst [vmem:[#allocation2 + $0x38] sm:$0xff] %v542_v49  ;;  %545 = vst [vmem:[#allocation2 + $0x10] sm:$0xff] %v537_v50  ;;  %2045 = vmatprep.mubr.bf16.mxu1 (!%p1912_p11), %v2688_v6  ;;  %v947_v58 = vld [vmem:[#allocation2 + $0x20] sm:$0xff] (!%p1912_p11) }
 0x11e   : > { %549 = vst [vmem:[#allocation2 + $0x30] sm:$0xff] %v541_v51 }
 0x120   : > { %2158 = vmatmul.mubr.msk.bf16.gmra.mrb[8].mxu0 %vm395_vm0, %v2264_v59  ;;  %v948_v59 = vld [vmem:[#allocation2 + $0x28] sm:$0xff] }
 0x121   : > { %2161 = vmatprep.mubr.msk.bf16.mxu0 %vm395_vm0, %v2265_v60 }
 0x123   : > { %v946_v57 = vld [vmem:[#allocation2 + $0x18] sm:$0xff] }
 0x124   : > { %v945_v56 = vld [vmem:[#allocation2 + $0x10] sm:$0xff] }
 0x125   : > { %v949_v60 = vld [vmem:[#allocation2 + $0x30] sm:$0xff] }
 0x128   : > { %2162 = vmatmul.mubr.msk.bf16.gmra.mrb[12].mxu0 %vm395_vm0, %v2266_v61  ;;  %v950_v61 = vld [vmem:[#allocation2 + $0x38] sm:$0xff] }
 0x129   : > { %2165 = vmatprep.mubr.msk.bf16.mxu0 %vm395_vm0, %v2267_v62  ;;  %v1064_v62 = vld [vmem:[%s2614_s24] sm:$0xff] }
 0x12a   : > { %vm1072_vm2 = vnez %v1064_v62 }
 0x130   : > { %2166 = vmatmul.mubr.msk.bf16.gmra.mrb[16].mxu0 %vm395_vm0, %v2268_v63  ;;  %v1065_v63 = vld [vmem:[%s2614_s24 + $0x8] sm:$0xff] }
 0x131   : > { %2169 = vmatprep.mubr.msk.bf16.mxu0 %vm395_vm0, %v2269_v0  ;;  %vm1073_vm3 = vnez %v1065_v63  ;;  %v2482_v0 = vmov 0  }
 0x138   : > { %2170 = vmatmul.mubr.msk.bf16.gmra.mrb[20].mxu0 %vm395_vm0, %v2270_v1  ;;  %v1144_v1 = vsel %vm1072_vm2, 16843009, %v2482_v0 }
 0x139   : > { %2173 = vmatprep.mubr.msk.bf16.mxu0 %vm395_vm0, %v2271_v2  ;;  %v1145_v2 = vsel %vm1073_vm3, 16843009, %v2482_v0 }
 0x140   : > { %2174 = vmatmul.mubr.msk.bf16.gmra.mrb[24].mxu0 %vm395_vm0, %v2272_v3  ;;  %v1152_v3 = vunpack.c.0.s8 %v1144_v1 }
 0x141   : > { %2177 = vmatprep.mubr.msk.bf16.mxu0 %vm395_vm0, %v2273_v4  ;;  %v1153_v4 = vunpack.c.0.s8 %v1145_v2 }
 0x148   : > { %2178 = vmatmul.mubr.msk.bf16.gmra.mrb[28].mxu0 %vm395_vm0, %v2274_v5  ;;  %v1154_v5 = vunpack.c.1.s8 %v1144_v1 }
 0x1e3   : > { %v2151_v7 = vpop.f32.mrb[0].mxu0 }
 0x1e4   : > { %v800_v8 = vpop.f32.mrb[1].mxu0 }
 0x1e5   : > { %v2152_v9 = vpop.f32.mrb[2].mxu0 }
 0x1e6   : > { %v928_v10 = vpack.c.bf16 %v2152_v9, %v2151_v7  ;;  %v803_v11 = vpop.f32.mrb[3].mxu0  ;;  %v1184_v7 = vpack.c.b16 %v1153_v4, %v1152_v3  ;;  %v1067_v9 = vld [vmem:[%s2614_s24 + $0x18] sm:$0xff] }
 0x1e7   : > { %v927_v12 = vpack.c.bf16 %v803_v11, %v800_v8  ;;  %v1066_v8 = vld [vmem:[%s2614_s24 + $0x10] sm:$0xff]  ;;  %vm1075_vm5 = vnez %v1067_v9 }
 0x1e8   : > { %vm1074_vm4 = vnez %v1066_v8  ;;  %v1185_v11 = vpack.c.b8 %v1184_v7, %v1184_v7 }
 0x1ea   : > { %vm1216_vm6 = vnez %v1185_v11 }
 0x1eb   : > { %v2155_v13 = vpop.f32.mrb[4].mxu0 }
 0x1ec   : > { %v816_v14 = vpop.f32.mrb[5].mxu0 }
 0x1ed   : > { %v2156_v15 = vpop.f32.mrb[6].mxu0 }
 0x1ee   : > { %v930_v16 = vpack.c.bf16 %v2156_v15, %v2155_v13  ;;  %v819_v17 = vpop.f32.mrb[7].mxu0  ;;  %v1157_v13 = vunpack.c.2.s8 %v1145_v2  ;;  %v1158_v15 = vunpack.c.3.s8 %v1144_v1 }
 0x1ef   : > { %v929_v18 = vpack.c.bf16 %v819_v17, %v816_v14  ;;  %v2699_v17 = vsel %vm1074_vm4, 16843009, %v2482_v0 }
 0x1f3   : > { %v2159_v19 = vpop.f32.mrb[8].mxu0 }
 0x1f4   : > { %v832_v20 = vpop.f32.mrb[9].mxu0 }
 0x1f5   : > { %v2160_v21 = vpop.f32.mrb[10].mxu0 }
 0x1f6   : > { %v932_v22 = vpack.c.bf16 %v2160_v21, %v2159_v19  ;;  %v835_v23 = vpop.f32.mrb[11].mxu0 }
 0x1f7   : > { %v931_v24 = vpack.c.bf16 %v835_v23, %v832_v20  ;;  %v1160_v20 = vunpack.c.0.s8 %v2699_v17  ;;  %v1162_v23 = vunpack.c.1.s8 %v2699_v17 }
 0x1fb   : > { %v2163_v25 = vpop.f32.mrb[12].mxu0 }
 0x1fc   : > { %v848_v26 = vpop.f32.mrb[13].mxu0 }
 0x1fd   : > { %v2164_v27 = vpop.f32.mrb[14].mxu0 }
 0x1fe   : > { %v934_v28 = vpack.c.bf16 %v2164_v27, %v2163_v25  ;;  %v851_v29 = vpop.f32.mrb[15].mxu0  ;;  %v1232_v25 = vsel %vm1216_vm6, 16843009, %v2482_v0 }
 0x1ff   : > { %v933_v30 = vpack.c.bf16 %v851_v29, %v848_v26  ;;  %v1248_v29 = vunpack.c.0.s8 %v1232_v25 }
 0x201   : > { %vm2713_vm9 = vcmp.ne.s32.totalorder %v1248_v29, 0 }
 0x203   : > { %v2167_v31 = vpop.f32.mrb[16].mxu0 }
 0x204   : > { %v864_v32 = vpop.f32.mrb[17].mxu0 }
 0x205   : > { %v2168_v33 = vpop.f32.mrb[18].mxu0 }
 0x206   : > { %v936_v34 = vpack.c.bf16 %v2168_v33, %v2167_v31  ;;  %v867_v35 = vpop.f32.mrb[19].mxu0  ;;  %v1249_v33 = vunpack.c.1.s8 %v1232_v25 }
 0x207   : > { %v935_v36 = vpack.c.bf16 %v867_v35, %v864_v32 }
 0x208   : > { %vm2724_vm14 = vcmp.ne.s32.totalorder %v1249_v33, 0 }
 0x209   : > { %2029 = vmatprep.subr.bf16.mxu1 %v935_v36  ;;  %2061 = vmatprep.subr.bf16.mxu0 %v935_v36 }
 0x20a   : > { %2030 = vmatpush3.bf16.xpose.msra.mxu1 %v927_v12  ;;  %2062 = vmatpush3.bf16.msra.mxu0 %v927_v12  ;;  %v1156_v12 = vunpack.c.2.s8 %v1144_v1 }
 0x20b   : > { %v2171_v37 = vpop.f32.mrb[20].mxu0  ;;  %2031 = vmatprep.subr.bf16.mxu1 %v936_v34  ;;  %2063 = vmatprep.subr.bf16.mxu0 %v936_v34 }
 0x20c   : > { %v880_v38 = vpop.f32.mrb[21].mxu0  ;;  %v1188_v19 = vpack.c.b16 %v1157_v13, %v1156_v12 }
 0x20d   : > { %v2172_v39 = vpop.f32.mrb[22].mxu0 }
 0x20e   : > { %v938_v40 = vpack.c.bf16 %v2172_v39, %v2171_v37  ;;  %v883_v41 = vpop.f32.mrb[23].mxu0  ;;  %2064 = vmatpush3.bf16.msra.mxu0 %v928_v10  ;;  %v1189_v26 = vpack.c.b8 %v1188_v19, %v1188_v19 }
 0x20f   : > { %v937_v42 = vpack.c.bf16 %v883_v41, %v880_v38 }
 0x210   : > { %vm2706_vm8 = vnez %v1189_v26 }
 0x211   : > { %2065 = vmatprep.subr.bf16.mxu0 %v937_v42 }
 0x212   : > { %2032 = vmatpush3.bf16.xpose.msra.mxu1 %v928_v10  ;;  %2066 = vmatpush3.bf16.msra.mxu0 %v929_v18 }
 0x213   : > { %v2175_v43 = vpop.f32.mrb[24].mxu0  ;;  %2067 = vmatprep.subr.bf16.mxu0 %v938_v40  ;;  %2033 = vmatprep.subr.bf16.mxu1 %v937_v42  ;;  %v1164_v42 = vunpack.c.2.s8 %v2699_v17 }
 0x214   : > { %v896_v44 = vpop.f32.mrb[25].mxu0 }
 0x215   : > { %v2176_v45 = vpop.f32.mrb[26].mxu0 }
 0x216   : > { %v940_v46 = vpack.c.bf16 %v2176_v45, %v2175_v43  ;;  %v899_v47 = vpop.f32.mrb[27].mxu0  ;;  %2068 = vmatpush3.bf16.msra.mxu0 %v930_v16  ;;  %v1069_v45 = vld [vmem:[%s2614_s24 + $0x28] sm:$0xff] }
 0x217   : > { %v939_v48 = vpack.c.bf16 %v899_v47, %v896_v44  ;;  %v1068_v44 = vld [vmem:[%s2614_s24 + $0x20] sm:$0xff]  ;;  %vm1077_vm12 = vnez %v1069_v45 }
 0x218   : > { %vm1076_vm11 = vnez %v1068_v44  ;;  %v2740_v63 = vsel %vm1077_vm12, 16843009, %v2482_v0 }
 0x219   : > { %2069 = vmatprep.subr.bf16.mxu0 %v939_v48  ;;  %v2737_v62 = vsel %vm1076_vm11, 16843009, %v2482_v0  ;;  %v1175_v26 = vunpack.c.3.s8 %v2740_v63 }
 0x21a   : > { %2034 = vmatpush3.bf16.xpose.msra.mxu1 %v929_v18  ;;  %2070 = vmatpush3.bf16.msra.mxu0 %v931_v24  ;;  %v1147_v18 = vsel %vm1075_vm5, 16843009, %v2482_v0  ;;  %v1168_v13 = vunpack.c.0.s8 %v2737_v62 }
 0x21b   : > { %v2179_v49 = vpop.f32.mrb[28].mxu0  ;;  %2035 = vmatprep.subr.bf16.mxu1 %v938_v40  ;;  %2071 = vmatprep.subr.bf16.mxu0 %v940_v46  ;;  %v1161_v21 = vunpack.c.0.s8 %v1147_v18  ;;  %v1165_v43 = vunpack.c.2.s8 %v1147_v18 }
 0x21c   : > { %v912_v50 = vpop.f32.mrb[29].mxu0 }
 0x21d   : > { %v2180_v51 = vpop.f32.mrb[30].mxu0 }
 0x21e   : > { %v942_v52 = vpack.c.bf16 %v2180_v51, %v2179_v49  ;;  %v915_v53 = vpop.f32.mrb[31].mxu0  ;;  %2072 = vmatpush3.bf16.msra.mxu0 %v932_v22  ;;  %v1234_v51 = vsel %vm2706_vm8, 16843009, %v2482_v0 }
 0x21f   : > { %v941_v54 = vpack.c.bf16 %v915_v53, %v912_v50  ;;  %v1167_v53 = vunpack.c.3.s8 %v1147_v18 }
 0x221   : > { %2073 = vmatprep.subr.bf16.mxu0 %v941_v54 }
 0x222   : > { %2036 = vmatpush3.bf16.xpose.msra.mxu1 %v930_v16  ;;  %2074 = vmatpush3.bf16.msra.mxu0 %v933_v30  ;;  %v1159_v16 = vunpack.c.3.s8 %v1145_v2 }
 0x223   : > { %2075 = vmatprep.subr.bf16.mxu0 %v942_v52  ;;  %2037 = vmatprep.subr.bf16.mxu1 %v939_v48 }
 0x226   : > { %2076 = vmatpush3.bf16.msra.mxu0 %v934_v28 }
 0x22a   : > { %2038 = vmatpush3.bf16.xpose.msra.mxu1 %v931_v24  ;;  %v1163_v24 = vunpack.c.1.s8 %v1147_v18 }
 0x22b   : > { %2039 = vmatprep.subr.bf16.mxu1 %v940_v46 }
 0x22c   : > { %v1194_v31 = vpack.c.b16 %v1163_v24, %v1162_v23 }
 0x22e   : > { %v1195_v49 = vpack.c.b8 %v1194_v31, %v1194_v31  ;;  %v1171_v31 = vunpack.c.1.s8 %v2740_v63 }
 0x230   : > { %vm1221_vm2 = vnez %v1195_v49 }
 0x231   : > { %v1237_v9 = vsel %vm1221_vm2, 16843009, %v2482_v0 }
 0x232   : > { %2040 = vmatpush3.bf16.xpose.msra.mxu1 %v932_v22  ;;  %v1190_v22 = vpack.c.b16 %v1159_v16, %v1158_v15  ;;  %v1258_v25 = vunpack.c.0.s8 %v1237_v9 }
 0x233   : > { %2041 = vmatprep.subr.bf16.mxu1 %v941_v54 }
 0x23a   : > { %2042 = vmatpush3.bf16.xpose.msra.mxu1 %v933_v30  ;;  %v1191_v30 = vpack.c.b8 %v1190_v22, %v1190_v22 }
 0x23b   : > { %2043 = vmatprep.subr.bf16.mxu1 %v942_v52  ;;  %v1166_v52 = vunpack.c.3.s8 %v2699_v17 }
 0x23c   : > { %vm1219_vm10 = vnez %v1191_v30  ;;  %v1170_v30 = vunpack.c.1.s8 %v2737_v62 }
 0x23d   : > { %v2722_v54 = vsel %vm1219_vm10, 16843009, %v2482_v0 }
 0x23e   : > { %v1254_v3 = vunpack.c.0.s8 %v2722_v54  ;;  %v1255_v8 = vunpack.c.1.s8 %v2722_v54 }
 0x240   : > { %vm2758_vm5 = vcmp.ne.s32.totalorder %v1254_v3, 0  ;;  %vm2790_vm11 = vcmp.ne.s32.totalorder %v1255_v8, 0 }
 0x242   : > { %2044 = vmatpush3.bf16.xpose.msra.mxu1 %v934_v28  ;;  %v1192_v28 = vpack.c.b16 %v1161_v21, %v1160_v20 }
 0x244   : > { %v1193_v41 = vpack.c.b8 %v1192_v28, %v1192_v28 }
 0x246   : > { %vm1220_vm13 = vnez %v1193_v41 }
 0x247   : > { %v2744_v4 = vsel %vm1220_vm13, 16843009, %v2482_v0 }
 0x248   : > { %v1256_v20 = vunpack.c.0.s8 %v2744_v4  ;;  %v1257_v21 = vunpack.c.1.s8 %v2744_v4 }
 0x249   : > { %2046 = vmatmul.mubr.bf16.vlgmr.msra.gmra.mrb[0].mxu1 %v2688_v6  ;;  %v1155_v6 = vunpack.c.1.s8 %v1145_v2 }
 0x24a   : > { %2047 = vmatprep.mubr.bf16.mxu1 %v944_v55  ;;  %vm2807_vm12 = vcmp.ne.s32.totalorder %v1256_v20, 0  ;;  %vm2816_vm13 = vcmp.ne.s32.totalorder %v1257_v21, 0  ;;  %v1173_v20 = vunpack.c.2.s8 %v2740_v63  ;;  %v1070_v21 = vld [vmem:[%s2614_s24 + $0x30] sm:$0xff] }
 0x24b   : > { %v1186_v10 = vpack.c.b16 %v1155_v6, %v1154_v5  ;;  %v1198_v5 = vpack.c.b16 %v1167_v53, %v1166_v52  ;;  %v1202_v52 = vpack.c.b16 %v1171_v31, %v1170_v30 }
 0x24d   : > { %v1187_v14 = vpack.c.b8 %v1186_v10, %v1186_v10  ;;  %v1199_v22 = vpack.c.b8 %v1198_v5, %v1198_v5 }
 0x24f   : > { %vm1217_vm7 = vnez %v1187_v14  ;;  %v1169_v14 = vunpack.c.0.s8 %v2740_v63  ;;  %vm2786_vm10 = vnez %v1199_v22 }
 0x250   : > { %v1233_v27 = vsel %vm1217_vm7, 16843009, %v2482_v0 }
 0x251   : > { %2048 = vmatmul.mubr.bf16.gmra.mrb[4].mxu1 %v944_v55  ;;  %v1250_v36 = vunpack.c.0.s8 %v1233_v27  ;;  %v1251_v37 = vunpack.c.1.s8 %v1233_v27  ;;  %v1196_v55 = vpack.c.b16 %v1165_v43, %v1164_v42  ;;  %v1200_v29 = vpack.c.b16 %v1169_v14, %v1168_v13 }
 0x252   : > { %2049 = vmatprep.mubr.bf16.mxu1 %v945_v56 }
 0x253   : > { %vm2728_vm15 = vcmp.ne.s32.totalorder %v1250_v36, 0  ;;  %vm2732_vm0 = vcmp.ne.s32.totalorder %v1251_v37, 0  ;;  %v1197_v10 = vpack.c.b8 %v1196_v55, %v1196_v55  ;;  %v1259_v37 = vunpack.c.1.s8 %v1237_v9 }
 0x254   : > { %vm1947_vm7 = vmpackc.low %vm2732_vm0, %vm2724_vm14  ;;  %v2814_v55 = vsel %vm2786_vm10, 16843009, %v2482_v0 }
 0x255   : > { %vm2766_vm6 = vnez %v1197_v10  ;;  %vm1950_vm8 = vmpackc.low %vm2728_vm15, %vm2713_vm9  ;;  %v1263_v4 = vunpack.c.1.s8 %v2814_v55  ;;  %v1262_v31 = vunpack.c.0.s8 %v2814_v55 }
 0x259   : > { %2050 = vmatmul.mubr.bf16.gmra.mrb[8].mxu1 %v945_v56 }
 0x25a   : > { %2051 = vmatprep.mubr.bf16.mxu1 %v946_v57 }
 0x261   : > { %2052 = vmatmul.mubr.bf16.gmra.mrb[12].mxu1 %v946_v57 }
 0x262   : > { %2053 = vmatprep.mubr.bf16.mxu1 %v947_v58 }
 0x269   : > { %2054 = vmatmul.mubr.bf16.gmra.mrb[16].mxu1 %v947_v58 }
 0x26a   : > { %2055 = vmatprep.mubr.bf16.mxu1 %v948_v59 }
 0x271   : > { %2056 = vmatmul.mubr.bf16.gmra.mrb[20].mxu1 %v948_v59 }
 0x272   : > { %2057 = vmatprep.mubr.bf16.mxu1 %v949_v60 }
 0x279   : > { %2058 = vmatmul.mubr.bf16.gmra.mrb[24].mxu1 %v949_v60  ;;  %v1252_v60 = vunpack.c.0.s8 %v1234_v51 }
 0x27a   : > { %2059 = vmatprep.mubr.bf16.mxu1 %v950_v61 }
 0x27b   : > { %vm2750_vm3 = vcmp.ne.s32.totalorder %v1252_v60, 0 }
 0x27c   : > { %vm1956_vm2 = vmpackc.low %vm2758_vm5, %vm2750_vm3 }
 0x281   : > { %2060 = vmatmul.mubr.bf16.gmra.mrb[28].mxu1 %v950_v61  ;;  %v1253_v61 = vunpack.c.1.s8 %v1234_v51  ;;  %v1201_v51 = vpack.c.b8 %v1200_v29, %v1200_v29 }
 0x283   : > { %vm2754_vm4 = vcmp.ne.s32.totalorder %v1253_v61, 0 }
 0x31c   : > { %v985_v32 = vpop.f32.mrb[0].mxu1 }
 0x31d   : > { %v1080_v34 = vmul.f32 1.442695, %v985_v32  ;;  %v987_v35 = vpop.f32.mrb[1].mxu1 }
 0x31e   : > { %v1082_v39 = vmul.f32 1.442695, %v987_v35  ;;  %v989_v40 = vpop.f32.mrb[2].mxu1 }
 0x31f   : > { %2275 = vpow2.f32 %v1080_v34  ;;  %v1084_v46 = vmul.f32 1.442695, %v989_v40  ;;  %v991_v47 = vpop.f32.mrb[3].mxu1 }
 0x320   : > { %2277 = vpow2.f32 %v1082_v39  ;;  %v1086_v50 = vmul.f32 1.442695, %v991_v47  ;;  %v1238_v47 = vsel %vm2766_vm6, 16843009, %v2482_v0 }
 0x321   : > { %2279 = vpow2.f32 %v1084_v46  ;;  %v1260_v61 = vunpack.c.0.s8 %v1238_v47 }
 0x322   : > { %2281 = vpow2.f32 %v1086_v50 }
 0x323   : > { %vm2860_vm6 = vcmp.ne.s32.totalorder %v1260_v61, 0 }
 0x324   : > { %v995_v59 = vpop.f32.mrb[4].mxu1 }
 0x325   : > { %v1088_v1 = vmul.f32 1.442695, %v995_v59  ;;  %v997_v2 = vpop.f32.mrb[5].mxu1 }
 0x326   : > { %v1090_v6 = vmul.f32 1.442695, %v997_v2  ;;  %v999_v7 = vpop.f32.mrb[6].mxu1 }
 0x327   : > { %2283 = vpow2.f32 %v1088_v1  ;;  %v1092_v11 = vmul.f32 1.442695, %v999_v7  ;;  %v1001_v12 = vpop.f32.mrb[7].mxu1  ;;  %v1261_v1 = vunpack.c.1.s8 %v1238_v47 }
 0x328   : > { %2285 = vpow2.f32 %v1090_v6  ;;  %v1094_v15 = vmul.f32 1.442695, %v1001_v12  ;;  %v1203_v6 = vpack.c.b8 %v1202_v52, %v1202_v52  ;;  %v1172_v12 = vunpack.c.2.s8 %v2737_v62 }
 0x329   : > { %v2276_v18 = vpop.eup %2275  ;;  %2287 = vpow2.f32 %v1092_v11 }
 0x32a   : > { %v2278_v23 = vpop.eup %2277  ;;  %2289 = vpow2.f32 %v1094_v15  ;;  %v1312_v24 = vsel %vm2713_vm9, %v2276_v18, 0.0  ;;  %vm2824_vm9 = vcmp.ne.s32.totalorder %v1258_v25, 0  ;;  %v1174_v25 = vunpack.c.3.s8 %v2737_v62 }
 0x32b   : > { %v2280_v27 = vpop.eup %2279  ;;  %v1313_v28 = vsel %vm2724_vm14, %v2278_v23, 0.0  ;;  %vm2820_vm14 = vcmp.ne.s32.totalorder %v1259_v37, 0  ;;  %vm2881_vm10 = vnez %v1203_v6 }
 0x32c   : > { %v2282_v32 = vpop.eup %2281  ;;  %v1951_v33 = vpack.c.bf16 %v2280_v27, %v2276_v18  ;;  %v1005_v34 = vpop.f32.mrb[8].mxu1  ;;  %v1360_v35 = vadd.f32 %v1313_v28, %v1312_v24  ;;  %v1314_v36 = vsel %vm2728_vm15, %v2280_v27, 0.0  ;;  %vm2833_vm15 = vnez %v1201_v51  ;;  %v1071_v27 = vld [vmem:[%s2614_s24 + $0x38] sm:$0xff] }
 0x32d   : > { %v1096_v38 = vmul.f32 1.442695, %v1005_v34  ;;  %v1007_v39 = vpop.f32.mrb[9].mxu1  ;;  %v1948_v40 = vpack.c.bf16 %v2282_v32, %v2278_v23  ;;  %v1315_v41 = vsel %vm2732_vm0, %v2282_v32, 0.0  ;;  %vm1953_vm0 = vmpackc.low %vm2790_vm11, %vm2754_vm4  ;;  %v1240_v17 = vsel %vm2833_vm15, 16843009, %v2482_v0 }
 0x32e   : > { %v1098_v43 = vmul.f32 1.442695, %v1007_v39  ;;  %1361 = vadd.xlane.f32.xlu0 %v1360_v35  ;;  %v1009_v44 = vpop.f32.mrb[10].mxu1  ;;  %v1363_v45 = vadd.f32 %v1315_v41, %v1314_v36  ;;  %v1204_v35 = vpack.c.b16 %v1173_v20, %v1172_v12  ;;  %v1206_v36 = vpack.c.b16 %v1175_v26, %v1174_v25 }
 0x32f   : > { %2291 = vpow2.f32 %v1096_v38  ;;  %v1100_v49 = vmul.f32 1.442695, %v1009_v44  ;;  %v1011_v50 = vpop.f32.mrb[11].mxu1  ;;  %1949 = vmatprep.mubr.msk.bf16.mxu0 %vm1947_vm7, %v1948_v40  ;;  %vm2870_vm7 = vcmp.ne.s32.totalorder %v1261_v1, 0  ;;  %v1264_v39 = vunpack.c.0.s8 %v1240_v17 }
 0x330   : > { %2293 = vpow2.f32 %v1098_v43  ;;  %v1102_v53 = vmul.f32 1.442695, %v1011_v50  ;;  %1952 = vmatmul.mubr.msk.bf16.vlgmr.msra.gmra.mrb[32].mxu0 %vm1950_vm8, %v1951_v33  ;;  %vm2877_vm8 = vcmp.ne.s32.totalorder %v1263_v4, 0  ;;  %v1265_v40 = vunpack.c.1.s8 %v1240_v17 }
 0x331   : > { %v2284_v56 = vpop.eup %2283  ;;  %2295 = vpow2.f32 %v1100_v49  ;;  %v1207_v61 = vpack.c.b8 %v1206_v36, %v1206_v36 }
 0x332   : > { %v2286_v59 = vpop.eup %2285  ;;  %2297 = vpow2.f32 %v1102_v53  ;;  %1364 = vadd.xlane.f32.xlu0 %v1363_v45  ;;  %v1316_v60 = vsel %vm2750_vm3, %v2284_v56, 0.0  ;;  %vm1079_vm3 = vnez %v1071_v27  ;;  %v1241_v53 = vsel %vm2881_vm10, 16843009, %v2482_v0 }
 0x333   : > { %v2288_v2 = vpop.eup %2287  ;;  %v1317_v3 = vsel %vm2754_vm4, %v2286_v59, 0.0  ;;  %vm1078_vm4 = vnez %v1070_v21  ;;  %v2901_v47 = vsel %vm1079_vm3, 16843009, %v2482_v0  ;;  %v1267_v48 = vunpack.c.1.s8 %v1241_v53 }
 0x334   : > { %v2290_v7 = vpop.eup %2289  ;;  %v1015_v8 = vpop.f32.mrb[12].mxu1  ;;  %v1366_v9 = vadd.f32 %v1317_v3, %v1316_v60  ;;  %v1957_v10 = vpack.c.bf16 %v2288_v2, %v2284_v56  ;;  %v1318_v11 = vsel %vm2758_vm5, %v2288_v2, 0.0  ;;  %v2891_v41 = vsel %vm1078_vm4, 16843009, %v2482_v0  ;;  %vm1959_vm5 = vmpackc.low %vm2820_vm14, %vm2816_vm13 }
 0x335   : > { %v1104_v13 = vmul.f32 1.442695, %v1015_v8  ;;  %v1017_v14 = vpop.f32.mrb[13].mxu1  ;;  %v1954_v15 = vpack.c.bf16 %v2290_v7, %v2286_v59  ;;  %v1319_v18 = vsel %vm2790_vm11, %v2290_v7, 0.0  ;;  %vm1962_vm11 = vmpackc.low %vm2824_vm9, %vm2807_vm12  ;;  %v1205_v60 = vpack.c.b8 %v1204_v35, %v1204_v35 }
 0x336   : > { %v1106_v22 = vmul.f32 1.442695, %v1017_v14  ;;  %1367 = vadd.xlane.f32.xlu1 %v1366_v9  ;;  %v1019_v23 = vpop.f32.mrb[14].mxu1  ;;  %v1369_v24 = vadd.f32 %v1319_v18, %v1318_v11  ;;  %v1176_v3 = vunpack.c.0.s8 %v2891_v41  ;;  %v1177_v4 = vunpack.c.0.s8 %v2901_v47 }
 0x337   : > { %2299 = vpow2.f32 %v1104_v13  ;;  %v1108_v28 = vmul.f32 1.442695, %v1019_v23  ;;  %v1021_v29 = vpop.f32.mrb[15].mxu1  ;;  %1955 = vmatprep.mubr.msk.bf16.mxu0 %vm1953_vm0, %v1954_v15  ;;  %v1178_v6 = vunpack.c.1.s8 %v2891_v41  ;;  %v1179_v57 = vunpack.c.1.s8 %v2901_v47  ;;  %vm1965_vm0 = vmpackc.low %vm2877_vm8, %vm2870_vm7 }
 0x338   : > { %2301 = vpow2.f32 %v1106_v22  ;;  %v1110_v62 = vmul.f32 1.442695, %v1021_v29  ;;  %1958 = vmatmul.mubr.msk.bf16.gmra.mrb[36].mxu0 %vm1956_vm2, %v1957_v10  ;;  %v1266_v10 = vunpack.c.0.s8 %v1241_v53  ;;  %vm2946_vm15 = vnez %v1207_v61 }
 0x339   : > { %v2292_v32 = vpop.eup %2291  ;;  %2303 = vpow2.f32 %v1108_v28  ;;  %v1208_v18 = vpack.c.b16 %v1177_v4, %v1176_v3  ;;  %v1210_v25 = vpack.c.b16 %v1179_v57, %v1178_v6  ;;  %vm2965_vm4 = vcmp.ne.s32.totalorder %v1267_v48, 0 }
 0x33a   : > { %v2294_v16 = vpop.eup %2293  ;;  %2305 = vpow2.f32 %v1110_v62  ;;  %1370 = vadd.xlane.f32.xlu1 %v1369_v24  ;;  %v1320_v34 = vsel %vm2807_vm12, %v2292_v32, 0.0  ;;  %vm2936_vm12 = vnez %v1205_v60  ;;  %vm2969_vm10 = vcmp.ne.s32.totalorder %v1266_v10, 0 }
 0x33b   : > { %v2296_v37 = vpop.eup %2295  ;;  %v1321_v38 = vsel %vm2816_vm13, %v2294_v16, 0.0  ;;  %vm2926_vm13 = vcmp.ne.s32.totalorder %v1262_v31, 0  ;;  %v1242_v31 = vsel %vm2936_vm12, 16843009, %v2482_v0  ;;  %v1243_v36 = vsel %vm2946_vm15, 16843009, %v2482_v0 }
 0x33c   : > { %v2298_v42 = vpop.eup %2297  ;;  %v1025_v43 = vpop.f32.mrb[16].mxu1  ;;  %v1372_v44 = vadd.f32 %v1321_v38, %v1320_v34  ;;  %v1963_v45 = vpack.c.bf16 %v2296_v37, %v2292_v32  ;;  %v1322_v46 = vsel %vm2824_vm9, %v2296_v37, 0.0  ;;  %vm2942_vm9 = vcmp.ne.s32.totalorder %v1265_v40, 0  ;;  %vm1968_vm2 = vmpackc.low %vm2926_vm13, %vm2860_vm6 }
 0x33d   : > { %v1112_v49 = vmul.f32 1.442695, %v1025_v43  ;;  %v1027_v50 = vpop.f32.mrb[17].mxu1  ;;  %v1960_v51 = vpack.c.bf16 %v2298_v42, %v2294_v16  ;;  %v1323_v52 = vsel %vm2820_vm14, %v2298_v42, 0.0  ;;  %vm2930_vm14 = vcmp.ne.s32.totalorder %v1264_v39, 0 }
 0x33e   : > { %v1114_v55 = vmul.f32 1.442695, %v1027_v50  ;;  %1373 = vadd.xlane.f32.xlu0 %v1372_v44  ;;  %v1029_v56 = vpop.f32.mrb[18].mxu1  ;;  %v1375_v59 = vadd.f32 %v1323_v52, %v1322_v46  ;;  %v1209_v37 = vpack.c.b8 %v1208_v18, %v1208_v18  ;;  %v1268_v39 = vunpack.c.0.s8 %v1242_v31  ;;  %vm1974_vm3 = vmpackc.low %vm2969_vm10, %vm2930_vm14 }
 0x33f   : > { %2307 = vpow2.f32 %v1112_v49  ;;  %v1116_v1 = vmul.f32 1.442695, %v1029_v56  ;;  %v1031_v2 = vpop.f32.mrb[19].mxu1  ;;  %1961 = vmatprep.mubr.msk.bf16.mxu0 %vm1959_vm5, %v1960_v51  ;;  %v1211_v33 = vpack.c.b8 %v1210_v25, %v1210_v25  ;;  %v1269_v63 = vunpack.c.1.s8 %v1242_v31 }
 0x340   : > { %2309 = vpow2.f32 %v1114_v55  ;;  %v1118_v5 = vmul.f32 1.442695, %v1031_v2  ;;  %1964 = vmatmul.mubr.msk.bf16.gmra.mrb[40].mxu0 %vm1962_vm11, %v1963_v45  ;;  %1376 = vadd.xlane.f32.xlu1 %v1375_v59  ;;  %v1180_v42 = vunpack.c.2.s8 %v2891_v41  ;;  %v1181_v43 = vunpack.c.2.s8 %v2901_v47 }
 0x341   : > { %v2300_v58 = vpop.eup %2299  ;;  %2311 = vpow2.f32 %v1116_v1  ;;  %v1271_v46 = vunpack.c.1.s8 %v1243_v36  ;;  %v1270_v49 = vunpack.c.0.s8 %v1243_v36  ;;  %v1182_v52 = vunpack.c.3.s8 %v2891_v41 }
 0x342   : > { %v2302_v9 = vpop.eup %2301  ;;  %2313 = vpow2.f32 %v1118_v5  ;;  %v1324_v54 = vsel %vm2860_vm6, %v2300_v58, 0.0  ;;  %vm2992_vm6 = vnez %v1209_v37  ;;  %v1183_v53 = vunpack.c.3.s8 %v2901_v47 }
 0x343   : > { %v2304_v12 = vpop.eup %2303  ;;  %v1325_v13 = vsel %vm2870_vm7, %v2302_v9, 0.0  ;;  %vm1971_vm7 = vmpackc.low %vm2965_vm4, %vm2942_vm9  ;;  %v1212_v4 = vpack.c.b16 %v1181_v43, %v1180_v42  ;;  %vm3014_vm5 = vcmp.ne.s32.totalorder %v1268_v39, 0  ;;  %vm3031_vm11 = vcmp.ne.s32.totalorder %v1269_v63, 0 }
 0x344   : > { %v2306_v20 = vpop.eup %2305  ;;  %v1035_v21 = vpop.f32.mrb[20].mxu1  ;;  %v1378_v22 = vadd.f32 %v1325_v13, %v1324_v54  ;;  %v1969_v23 = vpack.c.bf16 %v2304_v12, %v2300_v58  ;;  %v1326_v24 = vsel %vm2926_vm13, %v2304_v12, 0.0  ;;  %v1214_v54 = vpack.c.b16 %v1183_v53, %v1182_v52 }
 0x345   : > { %v1120_v26 = vmul.f32 1.442695, %v1035_v21  ;;  %v1037_v27 = vpop.f32.mrb[21].mxu1  ;;  %v1966_v28 = vpack.c.bf16 %v2306_v20, %v2302_v9  ;;  %v1327_v29 = vsel %vm2877_vm8, %v2306_v20, 0.0  ;;  %vm3004_vm8 = vnez %v1211_v33 }
 0x346   : > { %v1122_v62 = vmul.f32 1.442695, %v1037_v27  ;;  %1379 = vadd.xlane.f32.xlu0 %v1378_v22  ;;  %v1039_v17 = vpop.f32.mrb[22].mxu1  ;;  %v1381_v32 = vadd.f32 %v1327_v29, %v1326_v24  ;;  %v1244_v9 = vsel %vm2992_vm6, 16843009, %v2482_v0  ;;  %vm3038_vm13 = vcmp.ne.s32.totalorder %v1271_v46, 0 }
 0x347   : > { %2315 = vpow2.f32 %v1120_v26  ;;  %v1124_v34 = vmul.f32 1.442695, %v1039_v17  ;;  %v1041_v35 = vpop.f32.mrb[23].mxu1  ;;  %1967 = vmatprep.mubr.msk.bf16.mxu0 %vm1965_vm0, %v1966_v28  ;;  %v1245_v12 = vsel %vm3004_vm8, 16843009, %v2482_v0  ;;  %vm3042_vm12 = vcmp.ne.s32.totalorder %v1270_v49, 0 }
 0x348   : > { %2317 = vpow2.f32 %v1122_v62  ;;  %v1126_v38 = vmul.f32 1.442695, %v1041_v35  ;;  %1970 = vmatmul.mubr.msk.bf16.gmra.mrb[44].mxu0 %vm1968_vm2, %v1969_v23  ;;  %1382 = vadd.xlane.f32.xlu1 %v1381_v32  ;;  %v1213_v8 = vpack.c.b8 %v1212_v4, %v1212_v4  ;;  %v1272_v21 = vunpack.c.0.s8 %v1244_v9  ;;  %v1441_v4 = vld [vmem:[#allocation3] sm:$0xff] }
 0x349   : > { %v2308_v40 = vpop.eup %2307  ;;  %2319 = vpow2.f32 %v1124_v34  ;;  %v1273_v24 = vunpack.c.1.s8 %v1244_v9  ;;  %v1275_v25 = vunpack.c.1.s8 %v1245_v12  ;;  %v1215_v26 = vpack.c.b8 %v1214_v54, %v1214_v54 }
 0x34a   : > { %v2310_v44 = vpop.eup %2309  ;;  %2321 = vpow2.f32 %v1126_v38  ;;  %v1328_v45 = vsel %vm2930_vm14, %v2308_v40, 0.0  ;;  %vm1977_vm14 = vmpackc.low %vm3038_vm13, %vm3031_vm11  ;;  %v1274_v17 = vunpack.c.0.s8 %v1245_v12  ;;  %vm3062_vm15 = vnez %v1213_v8  ;;  %v1344_v8 = vld [vmem:[#allocation4] sm:$0xff] }
 0x34b   : > { %v2312_v30 = vpop.eup %2311  ;;  %v1329_v50 = vsel %vm2942_vm9, %v2310_v44, 0.0  ;;  %vm1980_vm9 = vmpackc.low %vm3042_vm12, %vm3014_vm5  ;;  %vm3071_vm0 = vcmp.ne.s32.totalorder %v1272_v21, 0  ;;  %vm1231_vm2 = vnez %v1215_v26  ;;  %v1246_v43 = vsel %vm3062_vm15, 16843009, %v2482_v0  ;;  %v1345_v21 = vld [vmem:[#allocation4 + $0x8] sm:$0xff] }
 0x34c   : > { %v2314_v55 = vpop.eup %2313  ;;  %v1045_v56 = vpop.f32.mrb[24].mxu1  ;;  %v1384_v59 = vadd.f32 %v1329_v50, %v1328_v45  ;;  %v1975_v60 = vpack.c.bf16 %v2312_v30, %v2308_v40  ;;  %v1330_v61 = vsel %vm2969_vm10, %v2312_v30, 0.0  ;;  %vm3082_vm10 = vcmp.ne.s32.totalorder %v1275_v25, 0  ;;  %v1354_v45 = vld [vmem:[#allocation4 + $0x50] sm:$0xff] }
 0x34d   : > { %v1128_v2 = vmul.f32 1.442695, %v1045_v56  ;;  %v1047_v41 = vpop.f32.mrb[25].mxu1  ;;  %v1972_v3 = vpack.c.bf16 %v2314_v55, %v2310_v44  ;;  %v1331_v47 = vsel %vm2965_vm4, %v2314_v55, 0.0  ;;  %vm3075_vm4 = vcmp.ne.s32.totalorder %v1273_v24, 0  ;;  %v1346_v24 = vld [vmem:[#allocation4 + $0x10] sm:$0xff] }
 0x34e   : > { %v1130_v5 = vmul.f32 1.442695, %v1047_v41  ;;  %1385 = vadd.xlane.f32.xlu0 %v1384_v59  ;;  %v1049_v6 = vpop.f32.mrb[26].mxu1  ;;  %v1387_v57 = vadd.f32 %v1331_v47, %v1330_v61  ;;  %vm3086_vm6 = vcmp.ne.s32.totalorder %v1274_v17, 0  ;;  %v1247_v50 = vsel %vm1231_vm2, 16843009, %v2482_v0 }
 0x34f   : > { %2323 = vpow2.f32 %v1128_v2  ;;  %v1132_v7 = vmul.f32 1.442695, %v1049_v6  ;;  %v1051_v48 = vpop.f32.mrb[27].mxu1  ;;  %1973 = vmatprep.mubr.msk.bf16.mxu0 %vm1971_vm7, %v1972_v3  ;;  %v1276_v53 = vunpack.c.0.s8 %v1246_v43  ;;  %vm1983_vm7 = vmpackc.low %vm3082_vm10, %vm3075_vm4  ;;  %v1277_v61 = vunpack.c.1.s8 %v1246_v43  ;;  %v1349_v17 = vld [vmem:[#allocation4 + $0x28] sm:$0xff] }
 0x350   : > { %2325 = vpow2.f32 %v1130_v5  ;;  %v1134_v10 = vmul.f32 1.442695, %v1051_v48  ;;  %1976 = vmatmul.mubr.msk.bf16.gmra.mrb[48].mxu0 %vm1974_vm3, %v1975_v60  ;;  %1388 = vadd.xlane.f32.xlu1 %v1387_v57  ;;  %vm1986_vm8 = vmpackc.low %vm3086_vm6, %vm3071_vm0  ;;  %v1279_v2 = vunpack.c.1.s8 %v1247_v50  ;;  %v1278_v41 = vunpack.c.0.s8 %v1247_v50 }
 0x351   : > { %v2316_v13 = vpop.eup %2315  ;;  %2327 = vpow2.f32 %v1132_v7  ;;  %vm3107_vm3 = vcmp.ne.s32.totalorder %v1276_v53, 0 }
 0x352   : > { %v2318_v18 = vpop.eup %2317  ;;  %2329 = vpow2.f32 %v1134_v10  ;;  %v1332_v20 = vsel %vm3014_vm5, %v2316_v13, 0.0  ;;  %vm3111_vm5 = vcmp.ne.s32.totalorder %v1277_v61, 0  ;;  %v1358_v61 = vld [vmem:[#allocation4 + $0x70] sm:$0xff] }
 0x353   : > { %v2320_v22 = vpop.eup %2319  ;;  %v1333_v23 = vsel %vm3031_vm11, %v2318_v18, 0.0  ;;  %vm3115_vm11 = vcmp.ne.s32.totalorder %v1279_v2, 0 }
 0x354   : > { %v2322_v27 = vpop.eup %2321  ;;  %v1055_v28 = vpop.f32.mrb[28].mxu1  ;;  %v1390_v29 = vadd.f32 %v1333_v23, %v1332_v20  ;;  %v1981_v31 = vpack.c.bf16 %v2320_v22, %v2316_v13  ;;  %v1334_v62 = vsel %vm3042_vm12, %v2320_v22, 0.0  ;;  %vm1989_vm12 = vmpackc.low %vm3115_vm11, %vm3111_vm5 }
 0x355   : > { %v1136_v32 = vmul.f32 1.442695, %v1055_v28  ;;  %v1057_v19 = vpop.f32.mrb[29].mxu1  ;;  %v1978_v16 = vpack.c.bf16 %v2322_v27, %v2318_v18  ;;  %v1335_v34 = vsel %vm3038_vm13, %v2322_v27, 0.0  ;;  %vm3119_vm13 = vcmp.ne.s32.totalorder %v1278_v41, 0  ;;  %v1347_v27 = vld [vmem:[#allocation4 + $0x18] sm:$0xff] }
 0x356   : > { %v1138_v36 = vmul.f32 1.442695, %v1057_v19  ;;  %1391 = vadd.xlane.f32.xlu0 %v1390_v29  ;;  %v1059_v37 = vpop.f32.mrb[30].mxu1  ;;  %v1393_v38 = vadd.f32 %v1335_v34, %v1334_v62  ;;  %v1350_v34 = vld [vmem:[#allocation4 + $0x30] sm:$0xff] }
 0x357   : > { %2331 = vpow2.f32 %v1136_v32  ;;  %v1140_v39 = vmul.f32 1.442695, %v1059_v37  ;;  %v1061_v33 = vpop.f32.mrb[31].mxu1  ;;  %1979 = vmatprep.mubr.msk.bf16.mxu0 %vm1977_vm14, %v1978_v16  ;;  %vm1992_vm14 = vmpackc.low %vm3119_vm13, %vm3107_vm3 }
 0x358   : > { %2333 = vpow2.f32 %v1138_v36  ;;  %v1142_v63 = vmul.f32 1.442695, %v1061_v33  ;;  %1982 = vmatmul.mubr.msk.bf16.gmra.mrb[52].mxu0 %vm1980_vm9, %v1981_v31  ;;  %1394 = vadd.xlane.f32.xlu1 %v1393_v38  ;;  %v1348_v31 = vld [vmem:[#allocation4 + $0x20] sm:$0xff]  ;;  %v1351_v36 = vld [vmem:[#allocation4 + $0x38] sm:$0xff] }
 0x359   : > { %v2324_v44 = vpop.eup %2323  ;;  %2335 = vpow2.f32 %v1140_v39  ;;  %v1352_v33 = vld [vmem:[#allocation4 + $0x40] sm:$0xff] }
 0x35a   : > { %v2326_v49 = vpop.eup %2325  ;;  %2337 = vpow2.f32 %v1142_v63  ;;  %v1336_v30 = vsel %vm3071_vm0, %v2324_v44, 0.0  ;;  %v1353_v63 = vld [vmem:[#allocation4 + $0x48] sm:$0xff] }
 0x35b   : > { %v2328_v51 = vpop.eup %2327  ;;  %v1337_v52 = vsel %vm3075_vm4, %v2326_v49, 0.0 }
 0x35c   : > { %v2330_v55 = vpop.eup %2329  ;;  %v1396_v56 = vadd.f32 %v1337_v52, %v1336_v30  ;;  %v1987_v59 = vpack.c.bf16 %v2328_v51, %v2324_v44  ;;  %v1338_v60 = vsel %vm3086_vm6, %v2328_v51, 0.0  ;;  %v1356_v52 = vld [vmem:[#allocation4 + $0x60] sm:$0xff] }
 0x35d   : > { %v1984_v1 = vpack.c.bf16 %v2330_v55, %v2326_v49  ;;  %v1339_v0 = vsel %vm3082_vm10, %v2330_v55, 0.0  ;;  %v1355_v49 = vld [vmem:[#allocation4 + $0x58] sm:$0xff]  ;;  %v1357_v55 = vld [vmem:[#allocation4 + $0x68] sm:$0xff] }
 0x35e   : > { %1397 = vadd.xlane.f32.xlu0 %v1396_v56  ;;  %v1399_v3 = vadd.f32 %v1339_v0, %v1338_v60  ;;  %v1359_v0 = vld [vmem:[#allocation4 + $0x78] sm:$0xff] }
 0x35f   : > { %1985 = vmatprep.mubr.msk.bf16.mxu0 %vm1983_vm7, %v1984_v1 }
 0x360   : > { %1988 = vmatmul.mubr.msk.bf16.gmra.mrb[56].mxu0 %vm1986_vm8, %v1987_v59  ;;  %1400 = vadd.xlane.f32.xlu1 %v1399_v3 }
 0x361   : > { %v2332_v5 = vpop.eup %2331 }
 0x362   : > { %v2334_v58 = vpop.eup %2333  ;;  %v1340_v7 = vsel %vm3107_vm3, %v2332_v5, 0.0 }
 0x363   : > { %v2336_v48 = vpop.eup %2335  ;;  %v1341_v9 = vsel %vm3111_vm5, %v2334_v58, 0.0 }
 0x364   : > { %v2338_v54 = vpop.eup %2337  ;;  %v1402_v10 = vadd.f32 %v1341_v9, %v1340_v7  ;;  %v1993_v11 = vpack.c.bf16 %v2336_v48, %v2332_v5  ;;  %v1342_v12 = vsel %vm3119_vm13, %v2336_v48, 0.0 }
 0x365   : > { %v1990_v13 = vpack.c.bf16 %v2338_v54, %v2334_v58  ;;  %v1343_v14 = vsel %vm3115_vm11, %v2338_v54, 0.0  ;;  %v1442_v58 = vld [vmem:[#allocation3 + $0x8] sm:$0xff] }
 0x366   : > { %1403 = vadd.xlane.f32.xlu0 %v1402_v10  ;;  %v1405_v15 = vadd.f32 %v1343_v14, %v1342_v12 }
 0x367   : > { %1991 = vmatprep.mubr.msk.bf16.mxu0 %vm1989_vm12, %v1990_v13 }
 0x368   : > { %1994 = vmatmul.mubr.msk.bf16.gmra.mrb[60].mxu0 %vm1992_vm14, %v1993_v11  ;;  %1406 = vadd.xlane.f32.xlu1 %v1405_v15  ;;  %v1443_v11 = vld [vmem:[#allocation3 + $0x10] sm:$0xff]  ;;  %v1444_v15 = vld [vmem:[#allocation3 + $0x18] sm:$0xff] }
 0x3bb   : > { %v1362_v18 = vpop.xlane.xlu0 %1361 }
 0x3bc   : > { %v1408_v20 = vadd.f32 %v1362_v18, %v1344_v8 }
 0x3be   : > { %1425 = vst.msk [vmem:[#allocation4] sm:$0xff] %vm567_vm1, %v1408_v20 }
 0x3bf   : > { %v1365_v22 = vpop.xlane.xlu0 %1364 }
 0x3c0   : > { %v1409_v23 = vadd.f32 %v1365_v22, %v1345_v21 }
 0x3c2   : > { %1426 = vst.msk [vmem:[#allocation4 + $0x8] sm:$0xff] %vm567_vm1, %v1409_v23  ;;  %v1445_v23 = vld [vmem:[#allocation3 + $0x20] sm:$0xff] }
 0x3c3   : > { %v1368_v25 = vpop.xlane.xlu1 %1367 }
 0x3c4   : > { %v1410_v26 = vadd.f32 %v1368_v25, %v1346_v24 }
 0x3c6   : > { %1427 = vst.msk [vmem:[#allocation4 + $0x10] sm:$0xff] %vm567_vm1, %v1410_v26 }
 0x3c7   : > { %v1371_v28 = vpop.xlane.xlu1 %1370 }
 0x3c8   : > { %v1411_v29 = vadd.f32 %v1371_v28, %v1347_v27  ;;  %v1446_v27 = vld [vmem:[#allocation3 + $0x28] sm:$0xff] }
 0x3ca   : > { %1428 = vst.msk [vmem:[#allocation4 + $0x18] sm:$0xff] %vm567_vm1, %v1411_v29 }
 0x3cb   : > { %v1374_v62 = vpop.xlane.xlu0 %1373 }
 0x3cc   : > { %v1412_v32 = vadd.f32 %v1374_v62, %v1348_v31 }
 0x3cd   : > { %v1377_v19 = vpop.xlane.xlu1 %1376 }
 0x3ce   : > { %1429 = vst.msk [vmem:[#allocation4 + $0x20] sm:$0xff] %vm567_vm1, %v1412_v32  ;;  %v1413_v16 = vadd.f32 %v1377_v19, %v1349_v17  ;;  %v1447_v32 = vld [vmem:[#allocation3 + $0x30] sm:$0xff] }
 0x3d0   : > { %1430 = vst.msk [vmem:[#allocation4 + $0x28] sm:$0xff] %vm567_vm1, %v1413_v16 }
 0x3d3   : > { %v1380_v35 = vpop.xlane.xlu0 %1379 }
 0x3d4   : > { %v1414_v37 = vadd.f32 %v1380_v35, %v1350_v34  ;;  %v1448_v35 = vld [vmem:[#allocation3 + $0x38] sm:$0xff] }
 0x3d5   : > { %v1383_v38 = vpop.xlane.xlu1 %1382 }
 0x3d6   : > { %1431 = vst.msk [vmem:[#allocation4 + $0x30] sm:$0xff] %vm567_vm1, %v1414_v37  ;;  %v1415_v39 = vadd.f32 %v1383_v38, %v1351_v36 }
 0x3d8   : > { %1432 = vst.msk [vmem:[#allocation4 + $0x38] sm:$0xff] %vm567_vm1, %v1415_v39 }
 0x3db   : > { %v1386_v40 = vpop.xlane.xlu0 %1385 }
 0x3dc   : > { %v1416_v42 = vadd.f32 %v1386_v40, %v1352_v33  ;;  %v1449_v40 = vld [vmem:[#allocation3 + $0x40] sm:$0xff] }
 0x3dd   : > { %v1389_v43 = vpop.xlane.xlu1 %1388 }
 0x3de   : > { %1433 = vst.msk [vmem:[#allocation4 + $0x40] sm:$0xff] %vm567_vm1, %v1416_v42  ;;  %v1417_v44 = vadd.f32 %v1389_v43, %v1353_v63 }
 0x3e0   : > { %1434 = vst.msk [vmem:[#allocation4 + $0x48] sm:$0xff] %vm567_vm1, %v1417_v44  ;;  %v1450_v44 = vld [vmem:[#allocation3 + $0x48] sm:$0xff] }
 0x3e3   : > { %v1392_v46 = vpop.xlane.xlu0 %1391 }
 0x3e4   : > { %v1418_v30 = vadd.f32 %v1392_v46, %v1354_v45 }
 0x3e5   : > { %v1395_v50 = vpop.xlane.xlu1 %1394 }
 0x3e6   : > { %1435 = vst.msk [vmem:[#allocation4 + $0x50] sm:$0xff] %vm567_vm1, %v1418_v30  ;;  %v1419_v51 = vadd.f32 %v1395_v50, %v1355_v49 }
 0x3e8   : > { %1436 = vst.msk [vmem:[#allocation4 + $0x58] sm:$0xff] %vm567_vm1, %v1419_v51  ;;  %v1451_v51 = vld [vmem:[#allocation3 + $0x50] sm:$0xff] }
 0x3eb   : > { %v1398_v53 = vpop.xlane.xlu0 %1397 }
 0x3ec   : > { %v1420_v56 = vadd.f32 %v1398_v53, %v1356_v52 }
 0x3ed   : > { %v1401_v59 = vpop.xlane.xlu1 %1400 }
 0x3ee   : > { %1437 = vst.msk [vmem:[#allocation4 + $0x60] sm:$0xff] %vm567_vm1, %v1420_v56  ;;  %v1421_v60 = vadd.f32 %v1401_v59, %v1357_v55  ;;  %v1452_v56 = vld [vmem:[#allocation3 + $0x58] sm:$0xff] }
 0x3f0   : > { %1438 = vst.msk [vmem:[#allocation4 + $0x68] sm:$0xff] %vm567_vm1, %v1421_v60 }
 0x3f3   : > { %v1404_v1 = vpop.xlane.xlu0 %1403 }
 0x3f4   : > { %v1422_v2 = vadd.f32 %v1404_v1, %v1358_v61 }
 0x3f5   : > { %v1407_v41 = vpop.xlane.xlu1 %1406 }
 0x3f6   : > { %1439 = vst.msk [vmem:[#allocation4 + $0x70] sm:$0xff] %vm567_vm1, %v1422_v2  ;;  %v1423_v3 = vadd.f32 %v1407_v41, %v1359_v0  ;;  %v1453_v2 = vld [vmem:[#allocation3 + $0x60] sm:$0xff] }
 0x3f8   : > { %1440 = vst.msk [vmem:[#allocation4 + $0x78] sm:$0xff] %vm567_vm1, %v1423_v3 }
 0x403   : > { %v2077_v47 = vpop.f32.mrb[32].mxu0 }
 0x404   : > { %v2078_v5 = vpop.f32.mrb[33].mxu0 }
 0x405   : > { %v2079_v6 = vadd.f32 %v2078_v5, %v2077_v47  ;;  %v2080_v57 = vpop.f32.mrb[34].mxu0 }
 0x406   : > { %v2081_v7 = vpop.f32.mrb[35].mxu0 }
 0x407   : > { %v1570_v48 = vadd.f32 %v2079_v6, %v1441_v4  ;;  %v2082_v9 = vadd.f32 %v2081_v7, %v2080_v57  ;;  %v1454_v4 = vld [vmem:[#allocation3 + $0x68] sm:$0xff] }
 0x409   : > { %1586 = vst [vmem:[#allocation3] sm:$0xff] %v1570_v48  ;;  %v1571_v54 = vadd.f32 %v2082_v9, %v1442_v58  ;;  %v1455_v48 = vld [vmem:[#allocation3 + $0x70] sm:$0xff] }
 0x40b   : > { %1587 = vst [vmem:[#allocation3 + $0x8] sm:$0xff] %v1571_v54  ;;  %v2083_v10 = vpop.f32.mrb[36].mxu0 }
 0x40c   : > { %v2084_v12 = vpop.f32.mrb[37].mxu0 }
 0x40d   : > { %v2085_v13 = vadd.f32 %v2084_v12, %v2083_v10  ;;  %v2086_v14 = vpop.f32.mrb[38].mxu0 }
 0x40e   : > { %v2087_v8 = vpop.f32.mrb[39].mxu0 }
 0x40f   : > { %v1572_v18 = vadd.f32 %v2085_v13, %v1443_v11  ;;  %v2088_v20 = vadd.f32 %v2087_v8, %v2086_v14  ;;  %v1456_v11 = vld [vmem:[#allocation3 + $0x78] sm:$0xff] }
 0x411   : > { %1588 = vst [vmem:[#allocation3 + $0x10] sm:$0xff] %v1572_v18  ;;  %v1573_v21 = vadd.f32 %v2088_v20, %v1444_v15 }
 0x413   : > { %1589 = vst [vmem:[#allocation3 + $0x18] sm:$0xff] %v1573_v21  ;;  %v2089_v22 = vpop.f32.mrb[40].mxu0 }
 0x414   : > { %v2090_v24 = vpop.f32.mrb[41].mxu0 }
 0x415   : > { %v2091_v25 = vadd.f32 %v2090_v24, %v2089_v22  ;;  %v2092_v26 = vpop.f32.mrb[42].mxu0 }
 0x416   : > { %v2093_v28 = vpop.f32.mrb[43].mxu0 }
 0x417   : > { %v1574_v29 = vadd.f32 %v2091_v25, %v1445_v23  ;;  %v2094_v31 = vadd.f32 %v2093_v28, %v2092_v26 }
 0x419   : > { %1590 = vst [vmem:[#allocation3 + $0x20] sm:$0xff] %v1574_v29  ;;  %v1575_v62 = vadd.f32 %v2094_v31, %v1446_v27 }
 0x41b   : > { %1591 = vst [vmem:[#allocation3 + $0x28] sm:$0xff] %v1575_v62  ;;  %v2095_v17 = vpop.f32.mrb[44].mxu0 }
 0x41c   : > { %v2096_v19 = vpop.f32.mrb[45].mxu0 }
 0x41d   : > { %v2097_v16 = vadd.f32 %v2096_v19, %v2095_v17  ;;  %v2098_v34 = vpop.f32.mrb[46].mxu0 }
 0x41e   : > { %v2099_v36 = vpop.f32.mrb[47].mxu0 }
 0x41f   : > { %v1576_v37 = vadd.f32 %v2097_v16, %v1447_v32  ;;  %v2100_v38 = vadd.f32 %v2099_v36, %v2098_v34 }
 0x421   : > { %1592 = vst [vmem:[#allocation3 + $0x30] sm:$0xff] %v1576_v37  ;;  %v1577_v39 = vadd.f32 %v2100_v38, %v1448_v35 }
 0x423   : > { %1593 = vst [vmem:[#allocation3 + $0x38] sm:$0xff] %v1577_v39  ;;  %v2101_v33 = vpop.f32.mrb[48].mxu0 }
 0x424   : > { %v2102_v63 = vpop.f32.mrb[49].mxu0 }
 0x425   : > { %v2103_v42 = vadd.f32 %v2102_v63, %v2101_v33  ;;  %v2104_v43 = vpop.f32.mrb[50].mxu0 }
 0x426   : > { %v2105_v45 = vpop.f32.mrb[51].mxu0 }
 0x427   : > { %v1578_v46 = vadd.f32 %v2103_v42, %v1449_v40  ;;  %v2106_v49 = vadd.f32 %v2105_v45, %v2104_v43 }
 0x429   : > { %1594 = vst [vmem:[#allocation3 + $0x40] sm:$0xff] %v1578_v46  ;;  %v1579_v30 = vadd.f32 %v2106_v49, %v1450_v44 }
 0x42b   : > { %1595 = vst [vmem:[#allocation3 + $0x48] sm:$0xff] %v1579_v30  ;;  %v2107_v50 = vpop.f32.mrb[52].mxu0 }
 0x42c   : > { %v2108_v52 = vpop.f32.mrb[53].mxu0 }
 0x42d   : > { %v2109_v53 = vadd.f32 %v2108_v52, %v2107_v50  ;;  %v2110_v55 = vpop.f32.mrb[54].mxu0 }
 0x42e   : > { %v2111_v59 = vpop.f32.mrb[55].mxu0 }
 0x42f   : > { %v1580_v60 = vadd.f32 %v2109_v53, %v1451_v51  ;;  %v2112_v61 = vadd.f32 %v2111_v59, %v2110_v55 }
 0x431   : > { %1596 = vst [vmem:[#allocation3 + $0x50] sm:$0xff] %v1580_v60  ;;  %v1581_v1 = vadd.f32 %v2112_v61, %v1452_v56 }
 0x433   : > { %1597 = vst [vmem:[#allocation3 + $0x58] sm:$0xff] %v1581_v1  ;;  %v2113_v0 = vpop.f32.mrb[56].mxu0 }
 0x434   : > { %v2114_v41 = vpop.f32.mrb[57].mxu0 }
 0x435   : > { %v2115_v3 = vadd.f32 %v2114_v41, %v2113_v0  ;;  %v2116_v47 = vpop.f32.mrb[58].mxu0 }
 0x436   : > { %v2117_v5 = vpop.f32.mrb[59].mxu0 }
 0x437   : > { %v1582_v6 = vadd.f32 %v2115_v3, %v1453_v2  ;;  %v2118_v57 = vadd.f32 %v2117_v5, %v2116_v47 }
 0x439   : > { %1598 = vst [vmem:[#allocation3 + $0x60] sm:$0xff] %v1582_v6  ;;  %v1583_v58 = vadd.f32 %v2118_v57, %v1454_v4 }
 0x43b   : > { %1599 = vst [vmem:[#allocation3 + $0x68] sm:$0xff] %v1583_v58  ;;  %v2119_v7 = vpop.f32.mrb[60].mxu0 }
 0x43c   : > { %v2120_v9 = vpop.f32.mrb[61].mxu0 }
 0x43d   : > { %v2121_v54 = vadd.f32 %v2120_v9, %v2119_v7  ;;  %v2122_v10 = vpop.f32.mrb[62].mxu0 }
 0x43e   : > { %v2123_v12 = vpop.f32.mrb[63].mxu0 }
 0x43f   : > { %v1584_v13 = vadd.f32 %v2121_v54, %v1455_v48  ;;  %v2124_v14 = vadd.f32 %v2123_v12, %v2122_v10 }
 0x441   : > { %1600 = vst [vmem:[#allocation3 + $0x70] sm:$0xff] %v1584_v13  ;;  %v1585_v15 = vadd.f32 %v2124_v14, %v1456_v11 }
 0x443   : > { %1601 = vst [vmem:[#allocation3 + $0x78] sm:$0xff] %v1585_v15 }
 0x444 PF: > { %v1623_v8 = vld [vmem:[#allocation4 + $0x10] sm:$0xff]  ;;  %v1621_v18 = vld [vmem:[#allocation4] sm:$0xff]  ;;  %v2483_v20 = vmov 0   ;;  %v1624_v21 = vld [vmem:[#allocation4 + $0x18] sm:$0xff]  ;;  %s2000_s24 = sshll.u32 %s2469_s13, 11  ;;  %s1779_s26 = sshll.u32 %s2647_s10, 4  ;;  %s3176_s26 = int_to_ptr.vmem [resolvable:$true] %s1779_s26 }
 0x445   : > { %2340 = vset.pattern.permute.xlu1 %v2483_v20  ;;  %2339 = vset.pattern.permute.xlu0 %v2483_v20  ;;  %v1622_v22 = vld [vmem:[#allocation4 + $0x8] sm:$0xff]  ;;  %v1625_v24 = vld [vmem:[#allocation4 + $0x20] sm:$0xff]  ;;  %v1628_v25 = vld [vmem:[#allocation4 + $0x38] sm:$0xff]  ;;  %s3174_s28 = scalar_lea.hbm %s3234_s7, %s2000_s24  ;;  %s3327_s13 = sand.u32 1, %s2461_s11  }
 0x446   : > { %1649 = vperm.xlu1 %2340, %v1623_v8   ;;  %1639 = vperm.xlu0 %2339, %v1621_v18   ;;  %v1626_v23 = vld [vmem:[#allocation4 + $0x28] sm:$0xff]  ;;  %v1627_v26 = vld [vmem:[#allocation4 + $0x30] sm:$0xff]  ;;  %v1629_v28 = vld [vmem:[#allocation4 + $0x40] sm:$0xff]  ;;  %s3182_s29 = scalar_lea.sflag [#allocation10], %s3327_s13  ;;  %s2397_s30 = scalar_lea.vmem %s3176_s26, 2048 }
 0x447   : > { %v1630_v27 = vld [vmem:[#allocation4 + $0x48] sm:$0xff]  ;;  %v1632_v29 = vld [vmem:[#allocation4 + $0x58] sm:$0xff]  ;;  %v1631_v31 = vld [vmem:[#allocation4 + $0x50] sm:$0xff]  ;;  %p2398_p12 = scmp.ne.s32.totalorder %s3176_s26, %s2397_s30  ;;  %s2484_s8 = smov [#allocation9]  }
 0x448   : > { %v1634_v62 = vld [vmem:[#allocation4 + $0x68] sm:$0xff]  ;;  %v1633_v17 = vld [vmem:[#allocation4 + $0x60] sm:$0xff]  ;;  %v1636_v32 = vld [vmem:[#allocation4 + $0x78] sm:$0xff]  ;;  %s2401_s25 = sshll.u32 %s2484_s8, 4  ;;  %s2402_s25 = int_to_ptr.vmem [resolvable:$false] %s2401_s25 }
 0x449   : > { %v1635_v19 = vld [vmem:[#allocation4 + $0x70] sm:$0xff]  ;;  %v1605_v33 = vld [vmem:[#allocation3] sm:$0xff]  ;;  %v1608_v46 = vld [vmem:[#allocation3 + $0x18] sm:$0xff]  ;;  %p2399_p13 = pnand %p2398_p12, %p2576_p0  ;;  %s2403_s27 = scalar_lea.vmem %s2402_s25, 4096 }
 0x44a   : > { %1654 = vperm.xlu1 %2340, %v1624_v21   ;;  %1644 = vperm.xlu0 %2339, %v1622_v22   ;;  %v1607_v39 = vld [vmem:[#allocation3 + $0x10] sm:$0xff]  ;;  %v1606_v49 = vld [vmem:[#allocation3 + $0x8] sm:$0xff]  ;;  %v1609_v59 = vld [vmem:[#allocation3 + $0x20] sm:$0xff]  ;;  %p2404_p2 = scmp.lt.s32.totalorder %s3176_s26, %s2402_s25  ;;  %p2405_p3 = scmp.lt.s32.totalorder %s2403_s27, %s2397_s30 }
 0x44b   : > { %v1610_v56 = vld [vmem:[#allocation3 + $0x28] sm:$0xff]  ;;  %v1612_v3 = vld [vmem:[#allocation3 + $0x38] sm:$0xff]  ;;  %v1611_v47 = vld [vmem:[#allocation3 + $0x30] sm:$0xff]  ;;  %p2400_p1 = pneg %p2399_p13 }
 0x44c   : > { %v1614_v48 = vld [vmem:[#allocation3 + $0x48] sm:$0xff]  ;;  %v1613_v9 = vld [vmem:[#allocation3 + $0x40] sm:$0xff]  ;;  %v1616_v15 = vld [vmem:[#allocation3 + $0x58] sm:$0xff]  ;;  %p2406_p5 = por %p2405_p3, %p2404_p2 }
 0x44d   : > { %v1615_v8 = vld [vmem:[#allocation3 + $0x50] sm:$0xff] }
 0x44e   : > { %1664 = vperm.xlu1 %2340, %v1626_v23   ;;  %1659 = vperm.xlu0 %2339, %v1625_v24   ;;  %v1618_v23 = vld [vmem:[#allocation3 + $0x68] sm:$0xff]  ;;  %v1617_v24 = vld [vmem:[#allocation3 + $0x60] sm:$0xff]  ;;  %p2407_p6 = pnand %p2406_p5, %p2400_p1 }
 0x452   : > { %1674 = vperm.xlu1 %2340, %v1628_v25   ;;  %1669 = vperm.xlu0 %2339, %v1627_v26  }
 0x456   : > { %1684 = vperm.xlu1 %2340, %v1630_v27   ;;  %1679 = vperm.xlu0 %2339, %v1629_v28  }
 0x45a   : > { %1694 = vperm.xlu1 %2340, %v1632_v29   ;;  %1689 = vperm.xlu0 %2339, %v1631_v31   ;;  %v1620_v29 = vld [vmem:[#allocation3 + $0x78] sm:$0xff]  ;;  %v1619_v31 = vld [vmem:[#allocation3 + $0x70] sm:$0xff] }
 0x45e   : > { %1704 = vperm.xlu1 %2340, %v1634_v62   ;;  %1699 = vperm.xlu0 %2339, %v1633_v17  }
 0x462   : > { %1714 = vperm.xlu1 %2340, %v1636_v32   ;;  %1709 = vperm.xlu0 %2339, %v1635_v19  }
 0x4c5   : > { %v1650_v16 = vpop.permute.xlu1 %1649  ;;  %v1640_v34 = vpop.permute.xlu0 %1639 }
 0x4c6   : > { %2341 = vrcp.f32 %v1650_v16 }
 0x4c7   : > { %2343 = vrcp.f32 %v1640_v34 }
 0x4c9   : > { %v1655_v35 = vpop.permute.xlu1 %1654  ;;  %v1645_v36 = vpop.permute.xlu0 %1644 }
 0x4ca   : > { %2345 = vrcp.f32 %v1655_v35 }
 0x4cb   : > { %2347 = vrcp.f32 %v1645_v36 }
 0x4cd   : > { %v1665_v37 = vpop.permute.xlu1 %1664  ;;  %v1660_v38 = vpop.permute.xlu0 %1659 }
 0x4ce   : > { %2349 = vrcp.f32 %v1665_v37 }
 0x4cf   : > { %2351 = vrcp.f32 %v1660_v38 }
 0x4d0   : > { %v2342_v40 = vpop.eup %2341 }
 0x4d1   : > { %v2344_v63 = vpop.eup %2343  ;;  %v1722_v42 = vmul.f32 %v2342_v40, %v1607_v39  ;;  %v1675_v43 = vpop.permute.xlu1 %1674 }
 0x4d2   : > { %v1670_v44 = vpop.permute.xlu0 %1669  ;;  %v1718_v45 = vmul.f32 %v2344_v63, %v1605_v33  ;;  %2353 = vrcp.f32 %v1675_v43 }
 0x4d3   : > { %1751 = vst [vmem:[%s2647_s10 + $0x10] sm:$0xff] %v1722_v42  ;;  %2355 = vrcp.f32 %v1670_v44 }
 0x4d4   : > { %v2346_v30 = vpop.eup %2345  ;;  %1749 = vst [vmem:[%s2647_s10] sm:$0xff] %v1718_v45 }
 0x4d5   : > { %v2348_v50 = vpop.eup %2347  ;;  %v1724_v51 = vmul.f32 %v2346_v30, %v1608_v46  ;;  %v1685_v52 = vpop.permute.xlu1 %1684 }
 0x4d6   : > { %v1680_v53 = vpop.permute.xlu0 %1679  ;;  %v1720_v55 = vmul.f32 %v2348_v50, %v1606_v49  ;;  %2357 = vrcp.f32 %v1685_v52 }
 0x4d7   : > { %1752 = vst [vmem:[%s2647_s10 + $0x18] sm:$0xff] %v1724_v51  ;;  %2359 = vrcp.f32 %v1680_v53 }
 0x4d8   : > { %v2350_v60 = vpop.eup %2349  ;;  %1750 = vst [vmem:[%s2647_s10 + $0x8] sm:$0xff] %v1720_v55 }
 0x4d9   : > { %v2352_v61 = vpop.eup %2351  ;;  %v1728_v1 = vmul.f32 %v2350_v60, %v1610_v56  ;;  %v1695_v0 = vpop.permute.xlu1 %1694 }
 0x4da   : > { %v1690_v2 = vpop.permute.xlu0 %1689  ;;  %v1726_v41 = vmul.f32 %v2352_v61, %v1609_v59  ;;  %2361 = vrcp.f32 %v1695_v0 }
 0x4db   : > { %1754 = vst [vmem:[%s2647_s10 + $0x28] sm:$0xff] %v1728_v1  ;;  %2363 = vrcp.f32 %v1690_v2 }
 0x4dc   : > { %v2354_v4 = vpop.eup %2353  ;;  %1753 = vst [vmem:[%s2647_s10 + $0x20] sm:$0xff] %v1726_v41 }
 0x4dd   : > { %v2356_v5 = vpop.eup %2355  ;;  %v1732_v6 = vmul.f32 %v2354_v4, %v1612_v3  ;;  %v1705_v57 = vpop.permute.xlu1 %1704 }
 0x4de   : > { %v1700_v58 = vpop.permute.xlu0 %1699  ;;  %v1730_v7 = vmul.f32 %v2356_v5, %v1611_v47  ;;  %2365 = vrcp.f32 %v1705_v57 }
 0x4df   : > { %1756 = vst [vmem:[%s2647_s10 + $0x38] sm:$0xff] %v1732_v6  ;;  %2367 = vrcp.f32 %v1700_v58 }
 0x4e0   : > { %v2358_v54 = vpop.eup %2357  ;;  %1755 = vst [vmem:[%s2647_s10 + $0x30] sm:$0xff] %v1730_v7 }
 0x4e1   : > { %v2360_v10 = vpop.eup %2359  ;;  %v1736_v11 = vmul.f32 %v2358_v54, %v1614_v48  ;;  %v1715_v12 = vpop.permute.xlu1 %1714 }
 0x4e2   : > { %v1710_v13 = vpop.permute.xlu0 %1709  ;;  %v1734_v14 = vmul.f32 %v2360_v10, %v1613_v9  ;;  %2369 = vrcp.f32 %v1715_v12 }
 0x4e3   : > { %1758 = vst [vmem:[%s2647_s10 + $0x48] sm:$0xff] %v1736_v11  ;;  %2371 = vrcp.f32 %v1710_v13 }
 0x4e4   : > { %v2362_v18 = vpop.eup %2361  ;;  %1757 = vst [vmem:[%s2647_s10 + $0x40] sm:$0xff] %v1734_v14 }
 0x4e5   : > { %v2364_v20 = vpop.eup %2363  ;;  %v1740_v21 = vmul.f32 %v2362_v18, %v1616_v15 }
 0x4e6   : > { %v1738_v22 = vmul.f32 %v2364_v20, %v1615_v8 }
 0x4e7   : > { %1760 = vst [vmem:[%s2647_s10 + $0x58] sm:$0xff] %v1740_v21 }
 0x4e8   : > { %v2366_v25 = vpop.eup %2365  ;;  %1759 = vst [vmem:[%s2647_s10 + $0x50] sm:$0xff] %v1738_v22 }
 0x4e9   : > { %v2368_v26 = vpop.eup %2367  ;;  %v1744_v27 = vmul.f32 %v2366_v25, %v1618_v23 }
 0x4ea   : > { %v1742_v28 = vmul.f32 %v2368_v26, %v1617_v24 }
 0x4eb   : > { %1762 = vst [vmem:[%s2647_s10 + $0x68] sm:$0xff] %v1744_v27 }
 0x4ec   : > { %v2370_v62 = vpop.eup %2369  ;;  %1761 = vst [vmem:[%s2647_s10 + $0x60] sm:$0xff] %v1742_v28 }
 0x4ed   : > { %v2372_v17 = vpop.eup %2371  ;;  %v1748_v32 = vmul.f32 %v2370_v62, %v1620_v29 }
 0x4ee   : > { %v1746_v19 = vmul.f32 %v2372_v17, %v1619_v31 }
 0x4ef   : > { %1764 = vst [vmem:[%s2647_s10 + $0x78] sm:$0xff] %v1748_v32 }
 0x4f0   : > { %1763 = vst [vmem:[%s2647_s10 + $0x70] sm:$0xff] %v1746_v19 }
 0x4f1   : > { %2410 = shalt.err (!%p2407_p6)
}
 0x4f2   : > { %s2411_s9 = scalar_lea.hbm %s3174_s28, 2048  ;;  %s2415_s10 = scalar_lea.hbm %s3234_s7, 4096 }
 0x4f3   : > { %p2412_p7 = scmp.ne.s32.totalorder %s3174_s28, %s2411_s9  ;;  %p2416_p10 = scmp.lt.u32.totalorder %s3174_s28, %s3234_s7 }
 0x4f4   : > { %p2417_p11 = scmp.lt.u32.totalorder %s2415_s10, %s2411_s9  ;;  %p2419_p13 = scmp.lt.u32.totalorder %s2411_s9, %s3174_s28 }
 0x4f5   : > { %p2413_p8 = pnand %p2412_p7, %p2576_p0 }
 0x4f6   : > { %p2418_p12 = por %p2417_p11, %p2416_p10 }
 0x4f7   : > { %p2414_p9 = pneg %p2413_p8 }
 0x4f8   : > { %p2420_p1 = por %p2419_p13, %p2418_p12 }
 0x4fa   : > { %p2421_p2 = pnand %p2420_p1, %p2414_p9 }
 0x4fc   : > { %2424 = shalt.err (!%p2421_p2)
}
 0x4fd   : > { %s2485_s16 = smov 128   ;;  %s2486_s17 = smov 8  }
 0x4fe   : > { %2185 = dma.vmem_to_hbm [thread:$0]  (%p2576_p0), %s3176_s26, 2048, %s3174_s28, %s3182_s29, %s2485_s16, %s2485_s16, %s2486_s17  }
 0x4ff PF: > { %p2191_p3 = scmp.ge.s32.totalorder %s2477_s15, 2  ;;  %s1794_s24 = sand.u32 1, %s2457_s2  }
 0x500   : > { %s1795_s19 = scalar_lea.sflag [#allocation10], %s1794_s24 }
 0x501   : > { %p2188_p5 = pnand %p2191_p3, %p2583_p4 }
 0x503   : > { %2452 = dma.done.wait (!%p2188_p5), %s1795_s19, 2048  }
 0x504   : > { %2454 = vsyncadd (!%p2188_p5), %s1795_s19, 4294965248  ;;  %s31_s15 = sadd.s32 1, %s2477_s15   ;;  %s3328_s13 = sld [smem:[#allocation13_spill]] }
 0x505   : > { %p28_p6 = scmp.ge.s32.totalorder %s31_s15, 4   ;;  %s3329_s14 = sld [smem:[#allocation14_spill]] }
 0x506   : > { %s3330_s2 = smov %s2461_s11  ;;  %s3331_s11 = smov %s2465_s12 }
 0x507   : > { %s3332_s12 = smov %s2589_s23  ;;  %30 = sbr.rel (!%p28_p6) target bundleno = 30 (0x1e), region = 89 }
 0x50e   :  { %1800 = vsyncpa [#allocation10], 1 }
 0x50f   :  { %1802 = vsyncpa [#allocation10 + $0x1], 1 }

</bundles_post_ra>
